<compile_context>
chip_gen: v5e
topology: v5e:2x2
jax: 0.10.0
libtpu: 0.0.40
codegen_flags: <defaults>
</compile_context>

<pallas_src>
import jax
import jax.numpy as jnp
from jax.experimental import pallas as pl
from jax.experimental.pallas import tpu as pltpu


def _layer_norm(v, gamma, eps=1e-5):
    mu = jnp.mean(v, axis=-1, keepdims=True)
    var = jnp.mean((v - mu) ** 2, axis=-1, keepdims=True)
    return (v - mu) * jax.lax.rsqrt(var + eps) * gamma


def _largest_divisor_leq(n, cap):
    for d in range(min(n, cap), 0, -1):
        if n % d == 0:
            return d
    return 1


def _gru_recurrence_kernel(wx_ref, r_ref, br_ref, gr_ref, h_out_ref, h_ref):
    """One grid step == one (batch_block, time_chunk) tile of the recurrence.

    wx_ref   : (T_CHUNK, B_BLK, 3H) precomputed LN(x@W)*gamma_wx + b_x
    r_ref    : (H, 3H)              recurrent kernel
    br_ref   : (1, 3H)              recurrent bias
    gr_ref   : (1, 3H)              LN gamma for Rh
    h_out_ref: (T_CHUNK, B_BLK, H)  hidden states (lane-dense last dim)
    h_ref    : (B_BLK, H)           VMEM scratch carrying h across time chunks
    """
    tc = pl.program_id(1)

    @pl.when(tc == 0)
    def _():
        # New batch block (or start of sequence): reset the carried hidden state.
        h_ref[...] = jnp.zeros_like(h_ref)

    r_w = r_ref[...]          # hoisted loads: time-invariant across the chunk loop
    b_r = br_ref[...]
    g_r = gr_ref[...]
    t_chunk = wx_ref.shape[0]
    hidden = h_ref.shape[-1]  # multiple of 128 -> gate slices are aligned views

    def step(tt, carry):
        h = h_ref[...]                                   # (B_BLK, H)
        wx = wx_ref[tt]                                  # (B_BLK, 3H)
        rh = jnp.dot(h, r_w, preferred_element_type=jnp.float32)
        rh = _layer_norm(rh, g_r) + b_r

        xz = wx[:, 0 * hidden:1 * hidden]
        xr = wx[:, 1 * hidden:2 * hidden]
        xg = wx[:, 2 * hidden:3 * hidden]
        hz = rh[:, 0 * hidden:1 * hidden]
        hr = rh[:, 1 * hidden:2 * hidden]
        hg = rh[:, 2 * hidden:3 * hidden]

        z = jax.nn.sigmoid(xz + hz)
        rr = jax.nn.sigmoid(xr + hr)
        g = jnp.tanh(xg + rr * hg)
        h_new = (1.0 - z) * g + z * h

        h_ref[...] = h_new
        h_out_ref[tt] = h_new                            # lane-dense (B_BLK, H) store
        return carry

    jax.lax.fori_loop(0, t_chunk, step, 0, unroll=(t_chunk <= 8))


def _run_recurrence(wx_tbc, r, br, gr, *, b_blk, t_chunk):
    T, B, H3 = wx_tbc.shape
    H = r.shape[0]
    grid = (B // b_blk, T // t_chunk)   # (parallel batch blocks, sequential time chunks)

    grid_spec = pltpu.PrefetchScalarGridSpec(
        num_scalar_prefetch=0,
        grid=grid,
        in_specs=[
            pl.BlockSpec((t_chunk, b_blk, H3), lambda b, t: (t, b, 0)),  # Wx chunk
            pl.BlockSpec((H, H3), lambda b, t: (0, 0)),                  # R
            pl.BlockSpec((1, H3), lambda b, t: (0, 0)),                  # b_r
            pl.BlockSpec((1, H3), lambda b, t: (0, 0)),                  # gamma_rh
        ],
        out_specs=pl.BlockSpec((t_chunk, b_blk, H), lambda b, t: (t, b, 0)),
        scratch_shapes=[pltpu.VMEM((b_blk, H), jnp.float32)],
    )

    return pl.pallas_call(
        _gru_recurrence_kernel,
        out_shape=jax.ShapeDtypeStruct((T, B, H), jnp.float32),
        grid_spec=grid_spec,
        compiler_params=pltpu.CompilerParams(
            # batch blocks are independent recurrences (megacore on v7x);
            # the time axis is a serial recurrence.
            dimension_semantics=("parallel", "arbitrary")),
    )(wx_tbc, r, br, gr)


@jax.jit
def generator_forward(x_btd, params):
    """x_btd: (B, T, D_in) float32 (batch_first, as in the PyTorch module)."""
    w, r, bx, br, gw, gr, wl, bl = params
    B, T, D_in = x_btd.shape
    H = r.shape[0]
    H3 = 3 * H
    out_dim = wl.shape[1]

    # (1) Input projection + LayerNorm hoisted out of the recurrence:
    #     one (T*B, D_in) x (D_in, 3H) matmul that actually fills the MXU.
    x_tb = jnp.transpose(x_btd, (1, 0, 2)).reshape(T * B, D_in)
    wx = jnp.dot(x_tb, w, preferred_element_type=jnp.float32)
    wx = (_layer_norm(wx, gw[0]) + bx[0]).reshape(T, B, H3)

    # (2) Serial LayerNormGRU recurrence in Pallas, time loop inside the kernel.
    b_blk = B // 2 if (B % 16 == 0) else B          # split batch across TCs when possible
    t_chunk = _largest_divisor_leq(T, 64)           # collapse the per-timestep grid
    h_all = _run_recurrence(wx, r, br, gr, b_blk=b_blk, t_chunk=t_chunk)  # (T, B, H)

    # (3) Output projection + tanh hoisted out of the recurrence:
    #     one (T*B, H) x (H, out_dim) matmul.
    y = jnp.tanh(jnp.dot(h_all.reshape(T * B, H), wl,
                         preferred_element_type=jnp.float32) + bl[0])
    return jnp.transpose(y.reshape(T, B, out_dim), (1, 0, 2))   # back to (B, T, out_dim)


def generator_reference(x_btd, params):
    """Pure-JAX reference of the same forward pass (for validation)."""
    w, r, bx, br, gw, gr, wl, bl = params
    H = r.shape[0]

    def cell(h, x_t):
        wx = _layer_norm(x_t @ w, gw[0]) + bx[0]
        rh = _layer_norm(h @ r, gr[0]) + br[0]
        xz, xr, xg = wx[:, :H], wx[:, H:2 * H], wx[:, 2 * H:]
        hz, hr, hg = rh[:, :H], rh[:, H:2 * H], rh[:, 2 * H:]
        z = jax.nn.sigmoid(xz + hz)
        rr = jax.nn.sigmoid(xr + hr)
        g = jnp.tanh(xg + rr * hg)
        h_new = (1.0 - z) * g + z * h
        return h_new, h_new

    x_tbd = jnp.transpose(x_btd, (1, 0, 2))
    h0 = jnp.zeros((x_btd.shape[0], H), jnp.float32)
    _, hs = jax.lax.scan(cell, h0, x_tbd)             # (T, B, H)
    y = jnp.tanh(hs @ wl + bl[0])
    return jnp.transpose(y, (1, 0, 2))


def init_params(key, in_dim, hidden_dim, out_dim):
    k = jax.random.split(key, 5)
    scale_w = 1.0 / jnp.sqrt(in_dim)
    scale_r = 1.0 / jnp.sqrt(hidden_dim)
    w = jax.random.uniform(k[0], (in_dim, 3 * hidden_dim), jnp.float32,
                           -scale_w, scale_w)
    r = jax.random.uniform(k[1], (hidden_dim, 3 * hidden_dim), jnp.float32,
                           -scale_r, scale_r)
    bx = jnp.zeros((1, 3 * hidden_dim), jnp.float32)
    br = jnp.zeros((1, 3 * hidden_dim), jnp.float32)
    gw = jnp.ones((1, 3 * hidden_dim), jnp.float32)
    gr = jnp.ones((1, 3 * hidden_dim), jnp.float32)
    wl = jax.random.uniform(k[2], (hidden_dim, out_dim), jnp.float32,
                            -scale_r, scale_r)
    bl = jax.random.uniform(k[3], (1, out_dim), jnp.float32,
                            -scale_r, scale_r)
    return (w, r, bx, br, gw, gr, wl, bl)


if __name__ == "__main__":
    B, T, IN_DIM, HIDDEN, OUT_DIM = 8, 8, 32, 128, 32   # HIDDEN must be a multiple of 128

    key = jax.random.PRNGKey(0)
    kx, kp = jax.random.split(key)
    x = jax.random.normal(kx, (B, T, IN_DIM), jnp.float32)
    params = init_params(kp, IN_DIM, HIDDEN, OUT_DIM)

    y = generator_forward(x, params)
    y = jax.block_until_ready(y)

    y_ref = generator_reference(x, params)
    assert y.shape == (B, T, OUT_DIM)
    assert jnp.allclose(y, y_ref, atol=1e-4, rtol=1e-4), \
        f"max abs err {jnp.max(jnp.abs(y - y_ref))}"

    print("KERNEL_OK")
</pallas_src>

<mosaic_0001>
module attributes {stable_mosaic.version = 11 : i64} {
  func.func @_gru_recurrence_kernel(%arg0: i32, %arg1: i32, %arg2: memref<8x8x384xf32, #tpu.memory_space<vmem>>, %arg3: memref<128x384xf32, #tpu.memory_space<vmem>>, %arg4: memref<1x384xf32, #tpu.memory_space<vmem>>, %arg5: memref<1x384xf32, #tpu.memory_space<vmem>>, %arg6: memref<8x8x128xf32, #tpu.memory_space<vmem>>, %arg7: memref<8x128xf32, #tpu.memory_space<vmem>>) attributes {dimension_semantics = [#tpu.dimension_semantics<parallel>, #tpu.dimension_semantics<arbitrary>], iteration_bounds = array<i64: 1, 1>, scalar_prefetch = 0 : i64, scratch_operands = 1 : i64, tpu.core_type = #tpu.core_type<tc>, window_params = [{transform_indices = @transform_0, window_bounds = array<i64: 8, 8, 384>}, {pipeline_mode = #tpu.pipeline_mode<synchronous>, transform_indices = @transform_1, window_bounds = array<i64: 128, 384>}, {pipeline_mode = #tpu.pipeline_mode<synchronous>, transform_indices = @transform_2, window_bounds = array<i64: 1, 384>}, {pipeline_mode = #tpu.pipeline_mode<synchronous>, transform_indices = @transform_3, window_bounds = array<i64: 1, 384>}, {transform_indices = @transform_4, window_bounds = array<i64: 8, 8, 128>}]} {
    %c0_i32 = arith.constant 0 : i32
    %0 = arith.cmpi eq, %arg1, %c0_i32 : i32
    %1 = arith.extui %0 : i1 to i32
    %c0_i32_0 = arith.constant 0 : i32
    %2 = arith.cmpi ne, %1, %c0_i32_0 : i32
    scf.if %2 {
      %cst_142 = arith.constant 0.000000e+00 : f32
      %470 = vector.broadcast %cst_142 : f32 to vector<8x128xf32>
      %c0_143 = arith.constant 0 : index
      %c0_144 = arith.constant 0 : index
      %471 = vector.load %arg7[%c0_143, %c0_144] : memref<8x128xf32, #tpu.memory_space<vmem>>, vector<8x128xf32>
      tpu.vector_store %arg7[%c0_143, %c0_144], %470 {strides = array<i32>} : memref<8x128xf32, #tpu.memory_space<vmem>>, vector<8x128xf32>,
    } else {
    }
    %c0 = arith.constant 0 : index
    %c0_1 = arith.constant 0 : index
    %3 = vector.load %arg3[%c0, %c0_1] : memref<128x384xf32, #tpu.memory_space<vmem>>, vector<128x384xf32>
    %c0_2 = arith.constant 0 : index
    %c0_3 = arith.constant 0 : index
    %4 = vector.load %arg4[%c0_2, %c0_3] : memref<1x384xf32, #tpu.memory_space<vmem>>, vector<1x384xf32>
    %c0_4 = arith.constant 0 : index
    %c0_5 = arith.constant 0 : index
    %5 = vector.load %arg5[%c0_4, %c0_5] : memref<1x384xf32, #tpu.memory_space<vmem>>, vector<1x384xf32>
    %c0_i32_6 = arith.constant 0 : i32
    %c0_7 = arith.constant 0 : index
    %c0_8 = arith.constant 0 : index
    %6 = vector.load %arg7[%c0_7, %c0_8] : memref<8x128xf32, #tpu.memory_space<vmem>>, vector<8x128xf32>
    %7 = arith.index_cast %c0_i32_6 : i32 to index
    %c0_9 = arith.constant 0 : index
    %c0_10 = arith.constant 0 : index
    %8 = vector.load %arg2[%7, %c0_9, %c0_10] : memref<8x8x384xf32, #tpu.memory_space<vmem>>, vector<1x8x384xf32>
    %9 = vector.shape_cast %8 : vector<1x8x384xf32> to vector<8x384xf32>
    %cst = arith.constant dense<0.000000e+00> : vector<8x384xf32>
    %10 = tpu.matmul %6, %3, %cst {dimension_numbers = #tpu.dot_dimension_numbers<[1], [0], [0], [1], [0, 0, 1, 1], [], []>} : vector<8x128xf32>, vector<128x384xf32>, vector<8x384xf32> -> vector<8x384xf32>
    %cst_11 = arith.constant dense<0.000000e+00> : vector<8xf32>
    %11 = vector.multi_reduction <add>, %10, %cst_11 [1] : vector<8x384xf32> to vector<8xf32>
    %12 = vector.shape_cast %11 : vector<8xf32> to vector<8x1xf32>
    %cst_12 = arith.constant 3.840000e+02 : f32
    %13 = vector.broadcast %cst_12 : f32 to vector<8x1xf32>
    %14 = arith.divf %12, %13 : vector<8x1xf32>
    %15 = vector.broadcast %14 : vector<8x1xf32> to vector<8x384xf32>
    %16 = arith.subf %10, %15 : vector<8x384xf32>
    %17 = arith.mulf %16, %16 : vector<8x384xf32>
    %cst_13 = arith.constant dense<0.000000e+00> : vector<8xf32>
    %18 = vector.multi_reduction <add>, %17, %cst_13 [1] : vector<8x384xf32> to vector<8xf32>
    %19 = vector.shape_cast %18 : vector<8xf32> to vector<8x1xf32>
    %cst_14 = arith.constant 3.840000e+02 : f32
    %20 = vector.broadcast %cst_14 : f32 to vector<8x1xf32>
    %21 = arith.divf %19, %20 : vector<8x1xf32>
    %22 = vector.broadcast %14 : vector<8x1xf32> to vector<8x384xf32>
    %23 = arith.subf %10, %22 : vector<8x384xf32>
    %cst_15 = arith.constant 9.99999974E-6 : f32
    %24 = vector.broadcast %cst_15 : f32 to vector<8x1xf32>
    %25 = arith.addf %21, %24 : vector<8x1xf32>
    %26 = math.rsqrt %25 : vector<8x1xf32>
    %27 = vector.broadcast %26 : vector<8x1xf32> to vector<8x384xf32>
    %28 = arith.mulf %23, %27 : vector<8x384xf32>
    %29 = vector.broadcast %5 : vector<1x384xf32> to vector<8x384xf32>
    %30 = arith.mulf %28, %29 : vector<8x384xf32>
    %31 = vector.broadcast %4 : vector<1x384xf32> to vector<8x384xf32>
    %32 = arith.addf %30, %31 : vector<8x384xf32>
    %33 = vector.extract_strided_slice %9 {offsets = [0, 0], sizes = [8, 128], strides = [1, 1]} : vector<8x384xf32> to vector<8x128xf32>
    %34 = vector.extract_strided_slice %9 {offsets = [0, 128], sizes = [8, 128], strides = [1, 1]} : vector<8x384xf32> to vector<8x128xf32>
    %35 = vector.extract_strided_slice %9 {offsets = [0, 256], sizes = [8, 128], strides = [1, 1]} : vector<8x384xf32> to vector<8x128xf32>
    %36 = vector.extract_strided_slice %32 {offsets = [0, 0], sizes = [8, 128], strides = [1, 1]} : vector<8x384xf32> to vector<8x128xf32>
    %37 = vector.extract_strided_slice %32 {offsets = [0, 128], sizes = [8, 128], strides = [1, 1]} : vector<8x384xf32> to vector<8x128xf32>
    %38 = vector.extract_strided_slice %32 {offsets = [0, 256], sizes = [8, 128], strides = [1, 1]} : vector<8x384xf32> to vector<8x128xf32>
    %39 = arith.addf %33, %36 : vector<8x128xf32>
    %40 = arith.negf %39 : vector<8x128xf32>
    %41 = math.exp %40 : vector<8x128xf32>
    %cst_16 = arith.constant 1.000000e+00 : f32
    %42 = vector.broadcast %cst_16 : f32 to vector<8x128xf32>
    %43 = arith.addf %42, %41 : vector<8x128xf32>
    %44 = arith.divf %42, %43 : vector<8x128xf32>
    %45 = arith.addf %34, %37 : vector<8x128xf32>
    %46 = arith.negf %45 : vector<8x128xf32>
    %47 = math.exp %46 : vector<8x128xf32>
    %cst_17 = arith.constant 1.000000e+00 : f32
    %48 = vector.broadcast %cst_17 : f32 to vector<8x128xf32>
    %49 = arith.addf %48, %47 : vector<8x128xf32>
    %50 = arith.divf %48, %49 : vector<8x128xf32>
    %51 = arith.mulf %50, %38 : vector<8x128xf32>
    %52 = arith.addf %35, %51 : vector<8x128xf32>
    %53 = math.tanh %52 : vector<8x128xf32>
    %cst_18 = arith.constant 1.000000e+00 : f32
    %54 = vector.broadcast %cst_18 : f32 to vector<8x128xf32>
    %55 = arith.subf %54, %44 : vector<8x128xf32>
    %56 = arith.mulf %55, %53 : vector<8x128xf32>
    %57 = arith.mulf %44, %6 : vector<8x128xf32>
    %58 = arith.addf %56, %57 : vector<8x128xf32>
    %c0_19 = arith.constant 0 : index
    %c0_20 = arith.constant 0 : index
    %59 = vector.load %arg7[%c0_19, %c0_20] : memref<8x128xf32, #tpu.memory_space<vmem>>, vector<8x128xf32>
    tpu.vector_store %arg7[%c0_19, %c0_20], %58 {strides = array<i32>} : memref<8x128xf32, #tpu.memory_space<vmem>>, vector<8x128xf32>,
    %60 = arith.index_cast %c0_i32_6 : i32 to index
    %c0_21 = arith.constant 0 : index
    %c0_22 = arith.constant 0 : index
    %61 = vector.load %arg6[%60, %c0_21, %c0_22] : memref<8x8x128xf32, #tpu.memory_space<vmem>>, vector<1x8x128xf32>
    %62 = vector.shape_cast %61 : vector<1x8x128xf32> to vector<8x128xf32>
    %63 = vector.shape_cast %58 : vector<8x128xf32> to vector<1x8x128xf32>
    tpu.vector_store %arg6[%60, %c0_21, %c0_22], %63 {strides = array<i32>} : memref<8x8x128xf32, #tpu.memory_space<vmem>>, vector<1x8x128xf32>,
    %c1_i32 = arith.constant 1 : i32
    %c0_23 = arith.constant 0 : index
    %c0_24 = arith.constant 0 : index
    %64 = vector.load %arg7[%c0_23, %c0_24] : memref<8x128xf32, #tpu.memory_space<vmem>>, vector<8x128xf32>
    %65 = arith.index_cast %c1_i32 : i32 to index
    %c0_25 = arith.constant 0 : index
    %c0_26 = arith.constant 0 : index
    %66 = vector.load %arg2[%65, %c0_25, %c0_26] : memref<8x8x384xf32, #tpu.memory_space<vmem>>, vector<1x8x384xf32>
    %67 = vector.shape_cast %66 : vector<1x8x384xf32> to vector<8x384xf32>
    %cst_27 = arith.constant dense<0.000000e+00> : vector<8x384xf32>
    %68 = tpu.matmul %64, %3, %cst_27 {dimension_numbers = #tpu.dot_dimension_numbers<[1], [0], [0], [1], [0, 0, 1, 1], [], []>} : vector<8x128xf32>, vector<128x384xf32>, vector<8x384xf32> -> vector<8x384xf32>
    %cst_28 = arith.constant dense<0.000000e+00> : vector<8xf32>
    %69 = vector.multi_reduction <add>, %68, %cst_28 [1] : vector<8x384xf32> to vector<8xf32>
    %70 = vector.shape_cast %69 : vector<8xf32> to vector<8x1xf32>
    %cst_29 = arith.constant 3.840000e+02 : f32
    %71 = vector.broadcast %cst_29 : f32 to vector<8x1xf32>
    %72 = arith.divf %70, %71 : vector<8x1xf32>
    %73 = vector.broadcast %72 : vector<8x1xf32> to vector<8x384xf32>
    %74 = arith.subf %68, %73 : vector<8x384xf32>
    %75 = arith.mulf %74, %74 : vector<8x384xf32>
    %cst_30 = arith.constant dense<0.000000e+00> : vector<8xf32>
    %76 = vector.multi_reduction <add>, %75, %cst_30 [1] : vector<8x384xf32> to vector<8xf32>
    %77 = vector.shape_cast %76 : vector<8xf32> to vector<8x1xf32>
    %cst_31 = arith.constant 3.840000e+02 : f32
    %78 = vector.broadcast %cst_31 : f32 to vector<8x1xf32>
    %79 = arith.divf %77, %78 : vector<8x1xf32>
    %80 = vector.broadcast %72 : vector<8x1xf32> to vector<8x384xf32>
    %81 = arith.subf %68, %80 : vector<8x384xf32>
    %cst_32 = arith.constant 9.99999974E-6 : f32
    %82 = vector.broadcast %cst_32 : f32 to vector<8x1xf32>
    %83 = arith.addf %79, %82 : vector<8x1xf32>
    %84 = math.rsqrt %83 : vector<8x1xf32>
    %85 = vector.broadcast %84 : vector<8x1xf32> to vector<8x384xf32>
    %86 = arith.mulf %81, %85 : vector<8x384xf32>
    %87 = vector.broadcast %5 : vector<1x384xf32> to vector<8x384xf32>
    %88 = arith.mulf %86, %87 : vector<8x384xf32>
    %89 = vector.broadcast %4 : vector<1x384xf32> to vector<8x384xf32>
    %90 = arith.addf %88, %89 : vector<8x384xf32>
    %91 = vector.extract_strided_slice %67 {offsets = [0, 0], sizes = [8, 128], strides = [1, 1]} : vector<8x384xf32> to vector<8x128xf32>
    %92 = vector.extract_strided_slice %67 {offsets = [0, 128], sizes = [8, 128], strides = [1, 1]} : vector<8x384xf32> to vector<8x128xf32>
    %93 = vector.extract_strided_slice %67 {offsets = [0, 256], sizes = [8, 128], strides = [1, 1]} : vector<8x384xf32> to vector<8x128xf32>
    %94 = vector.extract_strided_slice %90 {offsets = [0, 0], sizes = [8, 128], strides = [1, 1]} : vector<8x384xf32> to vector<8x128xf32>
    %95 = vector.extract_strided_slice %90 {offsets = [0, 128], sizes = [8, 128], strides = [1, 1]} : vector<8x384xf32> to vector<8x128xf32>
    %96 = vector.extract_strided_slice %90 {offsets = [0, 256], sizes = [8, 128], strides = [1, 1]} : vector<8x384xf32> to vector<8x128xf32>
    %97 = arith.addf %91, %94 : vector<8x128xf32>
    %98 = arith.negf %97 : vector<8x128xf32>
    %99 = math.exp %98 : vector<8x128xf32>
    %cst_33 = arith.constant 1.000000e+00 : f32
    %100 = vector.broadcast %cst_33 : f32 to vector<8x128xf32>
    %101 = arith.addf %100, %99 : vector<8x128xf32>
    %102 = arith.divf %100, %101 : vector<8x128xf32>
    %103 = arith.addf %92, %95 : vector<8x128xf32>
    %104 = arith.negf %103 : vector<8x128xf32>
    %105 = math.exp %104 : vector<8x128xf32>
    %cst_34 = arith.constant 1.000000e+00 : f32
    %106 = vector.broadcast %cst_34 : f32 to vector<8x128xf32>
    %107 = arith.addf %106, %105 : vector<8x128xf32>
    %108 = arith.divf %106, %107 : vector<8x128xf32>
    %109 = arith.mulf %108, %96 : vector<8x128xf32>
    %110 = arith.addf %93, %109 : vector<8x128xf32>
    %111 = math.tanh %110 : vector<8x128xf32>
    %cst_35 = arith.constant 1.000000e+00 : f32
    %112 = vector.broadcast %cst_35 : f32 to vector<8x128xf32>
    %113 = arith.subf %112, %102 : vector<8x128xf32>
    %114 = arith.mulf %113, %111 : vector<8x128xf32>
    %115 = arith.mulf %102, %64 : vector<8x128xf32>
    %116 = arith.addf %114, %115 : vector<8x128xf32>
    %c0_36 = arith.constant 0 : index
    %c0_37 = arith.constant 0 : index
    %117 = vector.load %arg7[%c0_36, %c0_37] : memref<8x128xf32, #tpu.memory_space<vmem>>, vector<8x128xf32>
    tpu.vector_store %arg7[%c0_36, %c0_37], %116 {strides = array<i32>} : memref<8x128xf32, #tpu.memory_space<vmem>>, vector<8x128xf32>,
    %118 = arith.index_cast %c1_i32 : i32 to index
    %c0_38 = arith.constant 0 : index
    %c0_39 = arith.constant 0 : index
    %119 = vector.load %arg6[%118, %c0_38, %c0_39] : memref<8x8x128xf32, #tpu.memory_space<vmem>>, vector<1x8x128xf32>
    %120 = vector.shape_cast %119 : vector<1x8x128xf32> to vector<8x128xf32>
    %121 = vector.shape_cast %116 : vector<8x128xf32> to vector<1x8x128xf32>
    tpu.vector_store %arg6[%118, %c0_38, %c0_39], %121 {strides = array<i32>} : memref<8x8x128xf32, #tpu.memory_space<vmem>>, vector<1x8x128xf32>,
    %c2_i32 = arith.constant 2 : i32
    %c0_40 = arith.constant 0 : index
    %c0_41 = arith.constant 0 : index
    %122 = vector.load %arg7[%c0_40, %c0_41] : memref<8x128xf32, #tpu.memory_space<vmem>>, vector<8x128xf32>
    %123 = arith.index_cast %c2_i32 : i32 to index
    %c0_42 = arith.constant 0 : index
    %c0_43 = arith.constant 0 : index
    %124 = vector.load %arg2[%123, %c0_42, %c0_43] : memref<8x8x384xf32, #tpu.memory_space<vmem>>, vector<1x8x384xf32>
    %125 = vector.shape_cast %124 : vector<1x8x384xf32> to vector<8x384xf32>
    %cst_44 = arith.constant dense<0.000000e+00> : vector<8x384xf32>
    %126 = tpu.matmul %122, %3, %cst_44 {dimension_numbers = #tpu.dot_dimension_numbers<[1], [0], [0], [1], [0, 0, 1, 1], [], []>} : vector<8x128xf32>, vector<128x384xf32>, vector<8x384xf32> -> vector<8x384xf32>
    %cst_45 = arith.constant dense<0.000000e+00> : vector<8xf32>
    %127 = vector.multi_reduction <add>, %126, %cst_45 [1] : vector<8x384xf32> to vector<8xf32>
    %128 = vector.shape_cast %127 : vector<8xf32> to vector<8x1xf32>
    %cst_46 = arith.constant 3.840000e+02 : f32
    %129 = vector.broadcast %cst_46 : f32 to vector<8x1xf32>
    %130 = arith.divf %128, %129 : vector<8x1xf32>
    %131 = vector.broadcast %130 : vector<8x1xf32> to vector<8x384xf32>
    %132 = arith.subf %126, %131 : vector<8x384xf32>
    %133 = arith.mulf %132, %132 : vector<8x384xf32>
    %cst_47 = arith.constant dense<0.000000e+00> : vector<8xf32>
    %134 = vector.multi_reduction <add>, %133, %cst_47 [1] : vector<8x384xf32> to vector<8xf32>
    %135 = vector.shape_cast %134 : vector<8xf32> to vector<8x1xf32>
    %cst_48 = arith.constant 3.840000e+02 : f32
    %136 = vector.broadcast %cst_48 : f32 to vector<8x1xf32>
    %137 = arith.divf %135, %136 : vector<8x1xf32>
    %138 = vector.broadcast %130 : vector<8x1xf32> to vector<8x384xf32>
    %139 = arith.subf %126, %138 : vector<8x384xf32>
    %cst_49 = arith.constant 9.99999974E-6 : f32
    %140 = vector.broadcast %cst_49 : f32 to vector<8x1xf32>
    %141 = arith.addf %137, %140 : vector<8x1xf32>
    %142 = math.rsqrt %141 : vector<8x1xf32>
    %143 = vector.broadcast %142 : vector<8x1xf32> to vector<8x384xf32>
    %144 = arith.mulf %139, %143 : vector<8x384xf32>
    %145 = vector.broadcast %5 : vector<1x384xf32> to vector<8x384xf32>
    %146 = arith.mulf %144, %145 : vector<8x384xf32>
    %147 = vector.broadcast %4 : vector<1x384xf32> to vector<8x384xf32>
    %148 = arith.addf %146, %147 : vector<8x384xf32>
    %149 = vector.extract_strided_slice %125 {offsets = [0, 0], sizes = [8, 128], strides = [1, 1]} : vector<8x384xf32> to vector<8x128xf32>
    %150 = vector.extract_strided_slice %125 {offsets = [0, 128], sizes = [8, 128], strides = [1, 1]} : vector<8x384xf32> to vector<8x128xf32>
    %151 = vector.extract_strided_slice %125 {offsets = [0, 256], sizes = [8, 128], strides = [1, 1]} : vector<8x384xf32> to vector<8x128xf32>
    %152 = vector.extract_strided_slice %148 {offsets = [0, 0], sizes = [8, 128], strides = [1, 1]} : vector<8x384xf32> to vector<8x128xf32>
    %153 = vector.extract_strided_slice %148 {offsets = [0, 128], sizes = [8, 128], strides = [1, 1]} : vector<8x384xf32> to vector<8x128xf32>
    %154 = vector.extract_strided_slice %148 {offsets = [0, 256], sizes = [8, 128], strides = [1, 1]} : vector<8x384xf32> to vector<8x128xf32>
    %155 = arith.addf %149, %152 : vector<8x128xf32>
    %156 = arith.negf %155 : vector<8x128xf32>
    %157 = math.exp %156 : vector<8x128xf32>
    %cst_50 = arith.constant 1.000000e+00 : f32
    %158 = vector.broadcast %cst_50 : f32 to vector<8x128xf32>
    %159 = arith.addf %158, %157 : vector<8x128xf32>
    %160 = arith.divf %158, %159 : vector<8x128xf32>
    %161 = arith.addf %150, %153 : vector<8x128xf32>
    %162 = arith.negf %161 : vector<8x128xf32>
    %163 = math.exp %162 : vector<8x128xf32>
    %cst_51 = arith.constant 1.000000e+00 : f32
    %164 = vector.broadcast %cst_51 : f32 to vector<8x128xf32>
    %165 = arith.addf %164, %163 : vector<8x128xf32>
    %166 = arith.divf %164, %165 : vector<8x128xf32>
    %167 = arith.mulf %166, %154 : vector<8x128xf32>
    %168 = arith.addf %151, %167 : vector<8x128xf32>
    %169 = math.tanh %168 : vector<8x128xf32>
    %cst_52 = arith.constant 1.000000e+00 : f32
    %170 = vector.broadcast %cst_52 : f32 to vector<8x128xf32>
    %171 = arith.subf %170, %160 : vector<8x128xf32>
    %172 = arith.mulf %171, %169 : vector<8x128xf32>
    %173 = arith.mulf %160, %122 : vector<8x128xf32>
    %174 = arith.addf %172, %173 : vector<8x128xf32>
    %c0_53 = arith.constant 0 : index
    %c0_54 = arith.constant 0 : index
    %175 = vector.load %arg7[%c0_53, %c0_54] : memref<8x128xf32, #tpu.memory_space<vmem>>, vector<8x128xf32>
    tpu.vector_store %arg7[%c0_53, %c0_54], %174 {strides = array<i32>} : memref<8x128xf32, #tpu.memory_space<vmem>>, vector<8x128xf32>,
    %176 = arith.index_cast %c2_i32 : i32 to index
    %c0_55 = arith.constant 0 : index
    %c0_56 = arith.constant 0 : index
    %177 = vector.load %arg6[%176, %c0_55, %c0_56] : memref<8x8x128xf32, #tpu.memory_space<vmem>>, vector<1x8x128xf32>
    %178 = vector.shape_cast %177 : vector<1x8x128xf32> to vector<8x128xf32>
    %179 = vector.shape_cast %174 : vector<8x128xf32> to vector<1x8x128xf32>
    tpu.vector_store %arg6[%176, %c0_55, %c0_56], %179 {strides = array<i32>} : memref<8x8x128xf32, #tpu.memory_space<vmem>>, vector<1x8x128xf32>,
    %c3_i32 = arith.constant 3 : i32
    %c0_57 = arith.constant 0 : index
    %c0_58 = arith.constant 0 : index
    %180 = vector.load %arg7[%c0_57, %c0_58] : memref<8x128xf32, #tpu.memory_space<vmem>>, vector<8x128xf32>
    %181 = arith.index_cast %c3_i32 : i32 to index
    %c0_59 = arith.constant 0 : index
    %c0_60 = arith.constant 0 : index
    %182 = vector.load %arg2[%181, %c0_59, %c0_60] : memref<8x8x384xf32, #tpu.memory_space<vmem>>, vector<1x8x384xf32>
    %183 = vector.shape_cast %182 : vector<1x8x384xf32> to vector<8x384xf32>
    %cst_61 = arith.constant dense<0.000000e+00> : vector<8x384xf32>
    %184 = tpu.matmul %180, %3, %cst_61 {dimension_numbers = #tpu.dot_dimension_numbers<[1], [0], [0], [1], [0, 0, 1, 1], [], []>} : vector<8x128xf32>, vector<128x384xf32>, vector<8x384xf32> -> vector<8x384xf32>
    %cst_62 = arith.constant dense<0.000000e+00> : vector<8xf32>
    %185 = vector.multi_reduction <add>, %184, %cst_62 [1] : vector<8x384xf32> to vector<8xf32>
    %186 = vector.shape_cast %185 : vector<8xf32> to vector<8x1xf32>
    %cst_63 = arith.constant 3.840000e+02 : f32
    %187 = vector.broadcast %cst_63 : f32 to vector<8x1xf32>
    %188 = arith.divf %186, %187 : vector<8x1xf32>
    %189 = vector.broadcast %188 : vector<8x1xf32> to vector<8x384xf32>
    %190 = arith.subf %184, %189 : vector<8x384xf32>
    %191 = arith.mulf %190, %190 : vector<8x384xf32>
    %cst_64 = arith.constant dense<0.000000e+00> : vector<8xf32>
    %192 = vector.multi_reduction <add>, %191, %cst_64 [1] : vector<8x384xf32> to vector<8xf32>
    %193 = vector.shape_cast %192 : vector<8xf32> to vector<8x1xf32>
    %cst_65 = arith.constant 3.840000e+02 : f32
    %194 = vector.broadcast %cst_65 : f32 to vector<8x1xf32>
    %195 = arith.divf %193, %194 : vector<8x1xf32>
    %196 = vector.broadcast %188 : vector<8x1xf32> to vector<8x384xf32>
    %197 = arith.subf %184, %196 : vector<8x384xf32>
    %cst_66 = arith.constant 9.99999974E-6 : f32
    %198 = vector.broadcast %cst_66 : f32 to vector<8x1xf32>
    %199 = arith.addf %195, %198 : vector<8x1xf32>
    %200 = math.rsqrt %199 : vector<8x1xf32>
    %201 = vector.broadcast %200 : vector<8x1xf32> to vector<8x384xf32>
    %202 = arith.mulf %197, %201 : vector<8x384xf32>
    %203 = vector.broadcast %5 : vector<1x384xf32> to vector<8x384xf32>
    %204 = arith.mulf %202, %203 : vector<8x384xf32>
    %205 = vector.broadcast %4 : vector<1x384xf32> to vector<8x384xf32>
    %206 = arith.addf %204, %205 : vector<8x384xf32>
    %207 = vector.extract_strided_slice %183 {offsets = [0, 0], sizes = [8, 128], strides = [1, 1]} : vector<8x384xf32> to vector<8x128xf32>
    %208 = vector.extract_strided_slice %183 {offsets = [0, 128], sizes = [8, 128], strides = [1, 1]} : vector<8x384xf32> to vector<8x128xf32>
    %209 = vector.extract_strided_slice %183 {offsets = [0, 256], sizes = [8, 128], strides = [1, 1]} : vector<8x384xf32> to vector<8x128xf32>
    %210 = vector.extract_strided_slice %206 {offsets = [0, 0], sizes = [8, 128], strides = [1, 1]} : vector<8x384xf32> to vector<8x128xf32>
    %211 = vector.extract_strided_slice %206 {offsets = [0, 128], sizes = [8, 128], strides = [1, 1]} : vector<8x384xf32> to vector<8x128xf32>
    %212 = vector.extract_strided_slice %206 {offsets = [0, 256], sizes = [8, 128], strides = [1, 1]} : vector<8x384xf32> to vector<8x128xf32>
    %213 = arith.addf %207, %210 : vector<8x128xf32>
    %214 = arith.negf %213 : vector<8x128xf32>
    %215 = math.exp %214 : vector<8x128xf32>
    %cst_67 = arith.constant 1.000000e+00 : f32
    %216 = vector.broadcast %cst_67 : f32 to vector<8x128xf32>
    %217 = arith.addf %216, %215 : vector<8x128xf32>
    %218 = arith.divf %216, %217 : vector<8x128xf32>
    %219 = arith.addf %208, %211 : vector<8x128xf32>
    %220 = arith.negf %219 : vector<8x128xf32>
    %221 = math.exp %220 : vector<8x128xf32>
    %cst_68 = arith.constant 1.000000e+00 : f32
    %222 = vector.broadcast %cst_68 : f32 to vector<8x128xf32>
    %223 = arith.addf %222, %221 : vector<8x128xf32>
    %224 = arith.divf %222, %223 : vector<8x128xf32>
    %225 = arith.mulf %224, %212 : vector<8x128xf32>
    %226 = arith.addf %209, %225 : vector<8x128xf32>
    %227 = math.tanh %226 : vector<8x128xf32>
    %cst_69 = arith.constant 1.000000e+00 : f32
    %228 = vector.broadcast %cst_69 : f32 to vector<8x128xf32>
    %229 = arith.subf %228, %218 : vector<8x128xf32>
    %230 = arith.mulf %229, %227 : vector<8x128xf32>
    %231 = arith.mulf %218, %180 : vector<8x128xf32>
    %232 = arith.addf %230, %231 : vector<8x128xf32>
    %c0_70 = arith.constant 0 : index
    %c0_71 = arith.constant 0 : index
    %233 = vector.load %arg7[%c0_70, %c0_71] : memref<8x128xf32, #tpu.memory_space<vmem>>, vector<8x128xf32>
    tpu.vector_store %arg7[%c0_70, %c0_71], %232 {strides = array<i32>} : memref<8x128xf32, #tpu.memory_space<vmem>>, vector<8x128xf32>,
    %234 = arith.index_cast %c3_i32 : i32 to index
    %c0_72 = arith.constant 0 : index
    %c0_73 = arith.constant 0 : index
    %235 = vector.load %arg6[%234, %c0_72, %c0_73] : memref<8x8x128xf32, #tpu.memory_space<vmem>>, vector<1x8x128xf32>
    %236 = vector.shape_cast %235 : vector<1x8x128xf32> to vector<8x128xf32>
    %237 = vector.shape_cast %232 : vector<8x128xf32> to vector<1x8x128xf32>
    tpu.vector_store %arg6[%234, %c0_72, %c0_73], %237 {strides = array<i32>} : memref<8x8x128xf32, #tpu.memory_space<vmem>>, vector<1x8x128xf32>,
    %c4_i32 = arith.constant 4 : i32
    %c0_74 = arith.constant 0 : index
    %c0_75 = arith.constant 0 : index
    %238 = vector.load %arg7[%c0_74, %c0_75] : memref<8x128xf32, #tpu.memory_space<vmem>>, vector<8x128xf32>
    %239 = arith.index_cast %c4_i32 : i32 to index
    %c0_76 = arith.constant 0 : index
    %c0_77 = arith.constant 0 : index
    %240 = vector.load %arg2[%239, %c0_76, %c0_77] : memref<8x8x384xf32, #tpu.memory_space<vmem>>, vector<1x8x384xf32>
    %241 = vector.shape_cast %240 : vector<1x8x384xf32> to vector<8x384xf32>
    %cst_78 = arith.constant dense<0.000000e+00> : vector<8x384xf32>
    %242 = tpu.matmul %238, %3, %cst_78 {dimension_numbers = #tpu.dot_dimension_numbers<[1], [0], [0], [1], [0, 0, 1, 1], [], []>} : vector<8x128xf32>, vector<128x384xf32>, vector<8x384xf32> -> vector<8x384xf32>
    %cst_79 = arith.constant dense<0.000000e+00> : vector<8xf32>
    %243 = vector.multi_reduction <add>, %242, %cst_79 [1] : vector<8x384xf32> to vector<8xf32>
    %244 = vector.shape_cast %243 : vector<8xf32> to vector<8x1xf32>
    %cst_80 = arith.constant 3.840000e+02 : f32
    %245 = vector.broadcast %cst_80 : f32 to vector<8x1xf32>
    %246 = arith.divf %244, %245 : vector<8x1xf32>
    %247 = vector.broadcast %246 : vector<8x1xf32> to vector<8x384xf32>
    %248 = arith.subf %242, %247 : vector<8x384xf32>
    %249 = arith.mulf %248, %248 : vector<8x384xf32>
    %cst_81 = arith.constant dense<0.000000e+00> : vector<8xf32>
    %250 = vector.multi_reduction <add>, %249, %cst_81 [1] : vector<8x384xf32> to vector<8xf32>
    %251 = vector.shape_cast %250 : vector<8xf32> to vector<8x1xf32>
    %cst_82 = arith.constant 3.840000e+02 : f32
    %252 = vector.broadcast %cst_82 : f32 to vector<8x1xf32>
    %253 = arith.divf %251, %252 : vector<8x1xf32>
    %254 = vector.broadcast %246 : vector<8x1xf32> to vector<8x384xf32>
    %255 = arith.subf %242, %254 : vector<8x384xf32>
    %cst_83 = arith.constant 9.99999974E-6 : f32
    %256 = vector.broadcast %cst_83 : f32 to vector<8x1xf32>
    %257 = arith.addf %253, %256 : vector<8x1xf32>
    %258 = math.rsqrt %257 : vector<8x1xf32>
    %259 = vector.broadcast %258 : vector<8x1xf32> to vector<8x384xf32>
    %260 = arith.mulf %255, %259 : vector<8x384xf32>
    %261 = vector.broadcast %5 : vector<1x384xf32> to vector<8x384xf32>
    %262 = arith.mulf %260, %261 : vector<8x384xf32>
    %263 = vector.broadcast %4 : vector<1x384xf32> to vector<8x384xf32>
    %264 = arith.addf %262, %263 : vector<8x384xf32>
    %265 = vector.extract_strided_slice %241 {offsets = [0, 0], sizes = [8, 128], strides = [1, 1]} : vector<8x384xf32> to vector<8x128xf32>
    %266 = vector.extract_strided_slice %241 {offsets = [0, 128], sizes = [8, 128], strides = [1, 1]} : vector<8x384xf32> to vector<8x128xf32>
    %267 = vector.extract_strided_slice %241 {offsets = [0, 256], sizes = [8, 128], strides = [1, 1]} : vector<8x384xf32> to vector<8x128xf32>
    %268 = vector.extract_strided_slice %264 {offsets = [0, 0], sizes = [8, 128], strides = [1, 1]} : vector<8x384xf32> to vector<8x128xf32>
    %269 = vector.extract_strided_slice %264 {offsets = [0, 128], sizes = [8, 128], strides = [1, 1]} : vector<8x384xf32> to vector<8x128xf32>
    %270 = vector.extract_strided_slice %264 {offsets = [0, 256], sizes = [8, 128], strides = [1, 1]} : vector<8x384xf32> to vector<8x128xf32>
    %271 = arith.addf %265, %268 : vector<8x128xf32>
    %272 = arith.negf %271 : vector<8x128xf32>
    %273 = math.exp %272 : vector<8x128xf32>
    %cst_84 = arith.constant 1.000000e+00 : f32
    %274 = vector.broadcast %cst_84 : f32 to vector<8x128xf32>
    %275 = arith.addf %274, %273 : vector<8x128xf32>
    %276 = arith.divf %274, %275 : vector<8x128xf32>
    %277 = arith.addf %266, %269 : vector<8x128xf32>
    %278 = arith.negf %277 : vector<8x128xf32>
    %279 = math.exp %278 : vector<8x128xf32>
    %cst_85 = arith.constant 1.000000e+00 : f32
    %280 = vector.broadcast %cst_85 : f32 to vector<8x128xf32>
    %281 = arith.addf %280, %279 : vector<8x128xf32>
    %282 = arith.divf %280, %281 : vector<8x128xf32>
    %283 = arith.mulf %282, %270 : vector<8x128xf32>
    %284 = arith.addf %267, %283 : vector<8x128xf32>
    %285 = math.tanh %284 : vector<8x128xf32>
    %cst_86 = arith.constant 1.000000e+00 : f32
    %286 = vector.broadcast %cst_86 : f32 to vector<8x128xf32>
    %287 = arith.subf %286, %276 : vector<8x128xf32>
    %288 = arith.mulf %287, %285 : vector<8x128xf32>
    %289 = arith.mulf %276, %238 : vector<8x128xf32>
    %290 = arith.addf %288, %289 : vector<8x128xf32>
    %c0_87 = arith.constant 0 : index
    %c0_88 = arith.constant 0 : index
    %291 = vector.load %arg7[%c0_87, %c0_88] : memref<8x128xf32, #tpu.memory_space<vmem>>, vector<8x128xf32>
    tpu.vector_store %arg7[%c0_87, %c0_88], %290 {strides = array<i32>} : memref<8x128xf32, #tpu.memory_space<vmem>>, vector<8x128xf32>,
    %292 = arith.index_cast %c4_i32 : i32 to index
    %c0_89 = arith.constant 0 : index
    %c0_90 = arith.constant 0 : index
    %293 = vector.load %arg6[%292, %c0_89, %c0_90] : memref<8x8x128xf32, #tpu.memory_space<vmem>>, vector<1x8x128xf32>
    %294 = vector.shape_cast %293 : vector<1x8x128xf32> to vector<8x128xf32>
    %295 = vector.shape_cast %290 : vector<8x128xf32> to vector<1x8x128xf32>
    tpu.vector_store %arg6[%292, %c0_89, %c0_90], %295 {strides = array<i32>} : memref<8x8x128xf32, #tpu.memory_space<vmem>>, vector<1x8x128xf32>,
    %c5_i32 = arith.constant 5 : i32
    %c0_91 = arith.constant 0 : index
    %c0_92 = arith.constant 0 : index
    %296 = vector.load %arg7[%c0_91, %c0_92] : memref<8x128xf32, #tpu.memory_space<vmem>>, vector<8x128xf32>
    %297 = arith.index_cast %c5_i32 : i32 to index
    %c0_93 = arith.constant 0 : index
    %c0_94 = arith.constant 0 : index
    %298 = vector.load %arg2[%297, %c0_93, %c0_94] : memref<8x8x384xf32, #tpu.memory_space<vmem>>, vector<1x8x384xf32>
    %299 = vector.shape_cast %298 : vector<1x8x384xf32> to vector<8x384xf32>
    %cst_95 = arith.constant dense<0.000000e+00> : vector<8x384xf32>
    %300 = tpu.matmul %296, %3, %cst_95 {dimension_numbers = #tpu.dot_dimension_numbers<[1], [0], [0], [1], [0, 0, 1, 1], [], []>} : vector<8x128xf32>, vector<128x384xf32>, vector<8x384xf32> -> vector<8x384xf32>
    %cst_96 = arith.constant dense<0.000000e+00> : vector<8xf32>
    %301 = vector.multi_reduction <add>, %300, %cst_96 [1] : vector<8x384xf32> to vector<8xf32>
    %302 = vector.shape_cast %301 : vector<8xf32> to vector<8x1xf32>
    %cst_97 = arith.constant 3.840000e+02 : f32
    %303 = vector.broadcast %cst_97 : f32 to vector<8x1xf32>
    %304 = arith.divf %302, %303 : vector<8x1xf32>
    %305 = vector.broadcast %304 : vector<8x1xf32> to vector<8x384xf32>
    %306 = arith.subf %300, %305 : vector<8x384xf32>
    %307 = arith.mulf %306, %306 : vector<8x384xf32>
    %cst_98 = arith.constant dense<0.000000e+00> : vector<8xf32>
    %308 = vector.multi_reduction <add>, %307, %cst_98 [1] : vector<8x384xf32> to vector<8xf32>
    %309 = vector.shape_cast %308 : vector<8xf32> to vector<8x1xf32>
    %cst_99 = arith.constant 3.840000e+02 : f32
    %310 = vector.broadcast %cst_99 : f32 to vector<8x1xf32>
    %311 = arith.divf %309, %310 : vector<8x1xf32>
    %312 = vector.broadcast %304 : vector<8x1xf32> to vector<8x384xf32>
    %313 = arith.subf %300, %312 : vector<8x384xf32>
    %cst_100 = arith.constant 9.99999974E-6 : f32
    %314 = vector.broadcast %cst_100 : f32 to vector<8x1xf32>
    %315 = arith.addf %311, %314 : vector<8x1xf32>
    %316 = math.rsqrt %315 : vector<8x1xf32>
    %317 = vector.broadcast %316 : vector<8x1xf32> to vector<8x384xf32>
    %318 = arith.mulf %313, %317 : vector<8x384xf32>
    %319 = vector.broadcast %5 : vector<1x384xf32> to vector<8x384xf32>
    %320 = arith.mulf %318, %319 : vector<8x384xf32>
    %321 = vector.broadcast %4 : vector<1x384xf32> to vector<8x384xf32>
    %322 = arith.addf %320, %321 : vector<8x384xf32>
    %323 = vector.extract_strided_slice %299 {offsets = [0, 0], sizes = [8, 128], strides = [1, 1]} : vector<8x384xf32> to vector<8x128xf32>
    %324 = vector.extract_strided_slice %299 {offsets = [0, 128], sizes = [8, 128], strides = [1, 1]} : vector<8x384xf32> to vector<8x128xf32>
    %325 = vector.extract_strided_slice %299 {offsets = [0, 256], sizes = [8, 128], strides = [1, 1]} : vector<8x384xf32> to vector<8x128xf32>
    %326 = vector.extract_strided_slice %322 {offsets = [0, 0], sizes = [8, 128], strides = [1, 1]} : vector<8x384xf32> to vector<8x128xf32>
    %327 = vector.extract_strided_slice %322 {offsets = [0, 128], sizes = [8, 128], strides = [1, 1]} : vector<8x384xf32> to vector<8x128xf32>
    %328 = vector.extract_strided_slice %322 {offsets = [0, 256], sizes = [8, 128], strides = [1, 1]} : vector<8x384xf32> to vector<8x128xf32>
    %329 = arith.addf %323, %326 : vector<8x128xf32>
    %330 = arith.negf %329 : vector<8x128xf32>
    %331 = math.exp %330 : vector<8x128xf32>
    %cst_101 = arith.constant 1.000000e+00 : f32
    %332 = vector.broadcast %cst_101 : f32 to vector<8x128xf32>
    %333 = arith.addf %332, %331 : vector<8x128xf32>
    %334 = arith.divf %332, %333 : vector<8x128xf32>
    %335 = arith.addf %324, %327 : vector<8x128xf32>
    %336 = arith.negf %335 : vector<8x128xf32>
    %337 = math.exp %336 : vector<8x128xf32>
    %cst_102 = arith.constant 1.000000e+00 : f32
    %338 = vector.broadcast %cst_102 : f32 to vector<8x128xf32>
    %339 = arith.addf %338, %337 : vector<8x128xf32>
    %340 = arith.divf %338, %339 : vector<8x128xf32>
    %341 = arith.mulf %340, %328 : vector<8x128xf32>
    %342 = arith.addf %325, %341 : vector<8x128xf32>
    %343 = math.tanh %342 : vector<8x128xf32>
    %cst_103 = arith.constant 1.000000e+00 : f32
    %344 = vector.broadcast %cst_103 : f32 to vector<8x128xf32>
    %345 = arith.subf %344, %334 : vector<8x128xf32>
    %346 = arith.mulf %345, %343 : vector<8x128xf32>
    %347 = arith.mulf %334, %296 : vector<8x128xf32>
    %348 = arith.addf %346, %347 : vector<8x128xf32>
    %c0_104 = arith.constant 0 : index
    %c0_105 = arith.constant 0 : index
    %349 = vector.load %arg7[%c0_104, %c0_105] : memref<8x128xf32, #tpu.memory_space<vmem>>, vector<8x128xf32>
    tpu.vector_store %arg7[%c0_104, %c0_105], %348 {strides = array<i32>} : memref<8x128xf32, #tpu.memory_space<vmem>>, vector<8x128xf32>,
    %350 = arith.index_cast %c5_i32 : i32 to index
    %c0_106 = arith.constant 0 : index
    %c0_107 = arith.constant 0 : index
    %351 = vector.load %arg6[%350, %c0_106, %c0_107] : memref<8x8x128xf32, #tpu.memory_space<vmem>>, vector<1x8x128xf32>
    %352 = vector.shape_cast %351 : vector<1x8x128xf32> to vector<8x128xf32>
    %353 = vector.shape_cast %348 : vector<8x128xf32> to vector<1x8x128xf32>
    tpu.vector_store %arg6[%350, %c0_106, %c0_107], %353 {strides = array<i32>} : memref<8x8x128xf32, #tpu.memory_space<vmem>>, vector<1x8x128xf32>,
    %c6_i32 = arith.constant 6 : i32
    %c0_108 = arith.constant 0 : index
    %c0_109 = arith.constant 0 : index
    %354 = vector.load %arg7[%c0_108, %c0_109] : memref<8x128xf32, #tpu.memory_space<vmem>>, vector<8x128xf32>
    %355 = arith.index_cast %c6_i32 : i32 to index
    %c0_110 = arith.constant 0 : index
    %c0_111 = arith.constant 0 : index
    %356 = vector.load %arg2[%355, %c0_110, %c0_111] : memref<8x8x384xf32, #tpu.memory_space<vmem>>, vector<1x8x384xf32>
    %357 = vector.shape_cast %356 : vector<1x8x384xf32> to vector<8x384xf32>
    %cst_112 = arith.constant dense<0.000000e+00> : vector<8x384xf32>
    %358 = tpu.matmul %354, %3, %cst_112 {dimension_numbers = #tpu.dot_dimension_numbers<[1], [0], [0], [1], [0, 0, 1, 1], [], []>} : vector<8x128xf32>, vector<128x384xf32>, vector<8x384xf32> -> vector<8x384xf32>
    %cst_113 = arith.constant dense<0.000000e+00> : vector<8xf32>
    %359 = vector.multi_reduction <add>, %358, %cst_113 [1] : vector<8x384xf32> to vector<8xf32>
    %360 = vector.shape_cast %359 : vector<8xf32> to vector<8x1xf32>
    %cst_114 = arith.constant 3.840000e+02 : f32
    %361 = vector.broadcast %cst_114 : f32 to vector<8x1xf32>
    %362 = arith.divf %360, %361 : vector<8x1xf32>
    %363 = vector.broadcast %362 : vector<8x1xf32> to vector<8x384xf32>
    %364 = arith.subf %358, %363 : vector<8x384xf32>
    %365 = arith.mulf %364, %364 : vector<8x384xf32>
    %cst_115 = arith.constant dense<0.000000e+00> : vector<8xf32>
    %366 = vector.multi_reduction <add>, %365, %cst_115 [1] : vector<8x384xf32> to vector<8xf32>
    %367 = vector.shape_cast %366 : vector<8xf32> to vector<8x1xf32>
    %cst_116 = arith.constant 3.840000e+02 : f32
    %368 = vector.broadcast %cst_116 : f32 to vector<8x1xf32>
    %369 = arith.divf %367, %368 : vector<8x1xf32>
    %370 = vector.broadcast %362 : vector<8x1xf32> to vector<8x384xf32>
    %371 = arith.subf %358, %370 : vector<8x384xf32>
    %cst_117 = arith.constant 9.99999974E-6 : f32
    %372 = vector.broadcast %cst_117 : f32 to vector<8x1xf32>
    %373 = arith.addf %369, %372 : vector<8x1xf32>
    %374 = math.rsqrt %373 : vector<8x1xf32>
    %375 = vector.broadcast %374 : vector<8x1xf32> to vector<8x384xf32>
    %376 = arith.mulf %371, %375 : vector<8x384xf32>
    %377 = vector.broadcast %5 : vector<1x384xf32> to vector<8x384xf32>
    %378 = arith.mulf %376, %377 : vector<8x384xf32>
    %379 = vector.broadcast %4 : vector<1x384xf32> to vector<8x384xf32>
    %380 = arith.addf %378, %379 : vector<8x384xf32>
    %381 = vector.extract_strided_slice %357 {offsets = [0, 0], sizes = [8, 128], strides = [1, 1]} : vector<8x384xf32> to vector<8x128xf32>
    %382 = vector.extract_strided_slice %357 {offsets = [0, 128], sizes = [8, 128], strides = [1, 1]} : vector<8x384xf32> to vector<8x128xf32>
    %383 = vector.extract_strided_slice %357 {offsets = [0, 256], sizes = [8, 128], strides = [1, 1]} : vector<8x384xf32> to vector<8x128xf32>
    %384 = vector.extract_strided_slice %380 {offsets = [0, 0], sizes = [8, 128], strides = [1, 1]} : vector<8x384xf32> to vector<8x128xf32>
    %385 = vector.extract_strided_slice %380 {offsets = [0, 128], sizes = [8, 128], strides = [1, 1]} : vector<8x384xf32> to vector<8x128xf32>
    %386 = vector.extract_strided_slice %380 {offsets = [0, 256], sizes = [8, 128], strides = [1, 1]} : vector<8x384xf32> to vector<8x128xf32>
    %387 = arith.addf %381, %384 : vector<8x128xf32>
    %388 = arith.negf %387 : vector<8x128xf32>
    %389 = math.exp %388 : vector<8x128xf32>
    %cst_118 = arith.constant 1.000000e+00 : f32
    %390 = vector.broadcast %cst_118 : f32 to vector<8x128xf32>
    %391 = arith.addf %390, %389 : vector<8x128xf32>
    %392 = arith.divf %390, %391 : vector<8x128xf32>
    %393 = arith.addf %382, %385 : vector<8x128xf32>
    %394 = arith.negf %393 : vector<8x128xf32>
    %395 = math.exp %394 : vector<8x128xf32>
    %cst_119 = arith.constant 1.000000e+00 : f32
    %396 = vector.broadcast %cst_119 : f32 to vector<8x128xf32>
    %397 = arith.addf %396, %395 : vector<8x128xf32>
    %398 = arith.divf %396, %397 : vector<8x128xf32>
    %399 = arith.mulf %398, %386 : vector<8x128xf32>
    %400 = arith.addf %383, %399 : vector<8x128xf32>
    %401 = math.tanh %400 : vector<8x128xf32>
    %cst_120 = arith.constant 1.000000e+00 : f32
    %402 = vector.broadcast %cst_120 : f32 to vector<8x128xf32>
    %403 = arith.subf %402, %392 : vector<8x128xf32>
    %404 = arith.mulf %403, %401 : vector<8x128xf32>
    %405 = arith.mulf %392, %354 : vector<8x128xf32>
    %406 = arith.addf %404, %405 : vector<8x128xf32>
    %c0_121 = arith.constant 0 : index
    %c0_122 = arith.constant 0 : index
    %407 = vector.load %arg7[%c0_121, %c0_122] : memref<8x128xf32, #tpu.memory_space<vmem>>, vector<8x128xf32>
    tpu.vector_store %arg7[%c0_121, %c0_122], %406 {strides = array<i32>} : memref<8x128xf32, #tpu.memory_space<vmem>>, vector<8x128xf32>,
    %408 = arith.index_cast %c6_i32 : i32 to index
    %c0_123 = arith.constant 0 : index
    %c0_124 = arith.constant 0 : index
    %409 = vector.load %arg6[%408, %c0_123, %c0_124] : memref<8x8x128xf32, #tpu.memory_space<vmem>>, vector<1x8x128xf32>
    %410 = vector.shape_cast %409 : vector<1x8x128xf32> to vector<8x128xf32>
    %411 = vector.shape_cast %406 : vector<8x128xf32> to vector<1x8x128xf32>
    tpu.vector_store %arg6[%408, %c0_123, %c0_124], %411 {strides = array<i32>} : memref<8x8x128xf32, #tpu.memory_space<vmem>>, vector<1x8x128xf32>,
    %c7_i32 = arith.constant 7 : i32
    %c0_125 = arith.constant 0 : index
    %c0_126 = arith.constant 0 : index
    %412 = vector.load %arg7[%c0_125, %c0_126] : memref<8x128xf32, #tpu.memory_space<vmem>>, vector<8x128xf32>
    %413 = arith.index_cast %c7_i32 : i32 to index
    %c0_127 = arith.constant 0 : index
    %c0_128 = arith.constant 0 : index
    %414 = vector.load %arg2[%413, %c0_127, %c0_128] : memref<8x8x384xf32, #tpu.memory_space<vmem>>, vector<1x8x384xf32>
    %415 = vector.shape_cast %414 : vector<1x8x384xf32> to vector<8x384xf32>
    %cst_129 = arith.constant dense<0.000000e+00> : vector<8x384xf32>
    %416 = tpu.matmul %412, %3, %cst_129 {dimension_numbers = #tpu.dot_dimension_numbers<[1], [0], [0], [1], [0, 0, 1, 1], [], []>} : vector<8x128xf32>, vector<128x384xf32>, vector<8x384xf32> -> vector<8x384xf32>
    %cst_130 = arith.constant dense<0.000000e+00> : vector<8xf32>
    %417 = vector.multi_reduction <add>, %416, %cst_130 [1] : vector<8x384xf32> to vector<8xf32>
    %418 = vector.shape_cast %417 : vector<8xf32> to vector<8x1xf32>
    %cst_131 = arith.constant 3.840000e+02 : f32
    %419 = vector.broadcast %cst_131 : f32 to vector<8x1xf32>
    %420 = arith.divf %418, %419 : vector<8x1xf32>
    %421 = vector.broadcast %420 : vector<8x1xf32> to vector<8x384xf32>
    %422 = arith.subf %416, %421 : vector<8x384xf32>
    %423 = arith.mulf %422, %422 : vector<8x384xf32>
    %cst_132 = arith.constant dense<0.000000e+00> : vector<8xf32>
    %424 = vector.multi_reduction <add>, %423, %cst_132 [1] : vector<8x384xf32> to vector<8xf32>
    %425 = vector.shape_cast %424 : vector<8xf32> to vector<8x1xf32>
    %cst_133 = arith.constant 3.840000e+02 : f32
    %426 = vector.broadcast %cst_133 : f32 to vector<8x1xf32>
    %427 = arith.divf %425, %426 : vector<8x1xf32>
    %428 = vector.broadcast %420 : vector<8x1xf32> to vector<8x384xf32>
    %429 = arith.subf %416, %428 : vector<8x384xf32>
    %cst_134 = arith.constant 9.99999974E-6 : f32
    %430 = vector.broadcast %cst_134 : f32 to vector<8x1xf32>
    %431 = arith.addf %427, %430 : vector<8x1xf32>
    %432 = math.rsqrt %431 : vector<8x1xf32>
    %433 = vector.broadcast %432 : vector<8x1xf32> to vector<8x384xf32>
    %434 = arith.mulf %429, %433 : vector<8x384xf32>
    %435 = vector.broadcast %5 : vector<1x384xf32> to vector<8x384xf32>
    %436 = arith.mulf %434, %435 : vector<8x384xf32>
    %437 = vector.broadcast %4 : vector<1x384xf32> to vector<8x384xf32>
    %438 = arith.addf %436, %437 : vector<8x384xf32>
    %439 = vector.extract_strided_slice %415 {offsets = [0, 0], sizes = [8, 128], strides = [1, 1]} : vector<8x384xf32> to vector<8x128xf32>
    %440 = vector.extract_strided_slice %415 {offsets = [0, 128], sizes = [8, 128], strides = [1, 1]} : vector<8x384xf32> to vector<8x128xf32>
    %441 = vector.extract_strided_slice %415 {offsets = [0, 256], sizes = [8, 128], strides = [1, 1]} : vector<8x384xf32> to vector<8x128xf32>
    %442 = vector.extract_strided_slice %438 {offsets = [0, 0], sizes = [8, 128], strides = [1, 1]} : vector<8x384xf32> to vector<8x128xf32>
    %443 = vector.extract_strided_slice %438 {offsets = [0, 128], sizes = [8, 128], strides = [1, 1]} : vector<8x384xf32> to vector<8x128xf32>
    %444 = vector.extract_strided_slice %438 {offsets = [0, 256], sizes = [8, 128], strides = [1, 1]} : vector<8x384xf32> to vector<8x128xf32>
    %445 = arith.addf %439, %442 : vector<8x128xf32>
    %446 = arith.negf %445 : vector<8x128xf32>
    %447 = math.exp %446 : vector<8x128xf32>
    %cst_135 = arith.constant 1.000000e+00 : f32
    %448 = vector.broadcast %cst_135 : f32 to vector<8x128xf32>
    %449 = arith.addf %448, %447 : vector<8x128xf32>
    %450 = arith.divf %448, %449 : vector<8x128xf32>
    %451 = arith.addf %440, %443 : vector<8x128xf32>
    %452 = arith.negf %451 : vector<8x128xf32>
    %453 = math.exp %452 : vector<8x128xf32>
    %cst_136 = arith.constant 1.000000e+00 : f32
    %454 = vector.broadcast %cst_136 : f32 to vector<8x128xf32>
    %455 = arith.addf %454, %453 : vector<8x128xf32>
    %456 = arith.divf %454, %455 : vector<8x128xf32>
    %457 = arith.mulf %456, %444 : vector<8x128xf32>
    %458 = arith.addf %441, %457 : vector<8x128xf32>
    %459 = math.tanh %458 : vector<8x128xf32>
    %cst_137 = arith.constant 1.000000e+00 : f32
    %460 = vector.broadcast %cst_137 : f32 to vector<8x128xf32>
    %461 = arith.subf %460, %450 : vector<8x128xf32>
    %462 = arith.mulf %461, %459 : vector<8x128xf32>
    %463 = arith.mulf %450, %412 : vector<8x128xf32>
    %464 = arith.addf %462, %463 : vector<8x128xf32>
    %c0_138 = arith.constant 0 : index
    %c0_139 = arith.constant 0 : index
    %465 = vector.load %arg7[%c0_138, %c0_139] : memref<8x128xf32, #tpu.memory_space<vmem>>, vector<8x128xf32>
    tpu.vector_store %arg7[%c0_138, %c0_139], %464 {strides = array<i32>} : memref<8x128xf32, #tpu.memory_space<vmem>>, vector<8x128xf32>,
    %466 = arith.index_cast %c7_i32 : i32 to index
    %c0_140 = arith.constant 0 : index
    %c0_141 = arith.constant 0 : index
    %467 = vector.load %arg6[%466, %c0_140, %c0_141] : memref<8x8x128xf32, #tpu.memory_space<vmem>>, vector<1x8x128xf32>
    %468 = vector.shape_cast %467 : vector<1x8x128xf32> to vector<8x128xf32>
    %469 = vector.shape_cast %464 : vector<8x128xf32> to vector<1x8x128xf32>
    tpu.vector_store %arg6[%466, %c0_140, %c0_141], %469 {strides = array<i32>} : memref<8x8x128xf32, #tpu.memory_space<vmem>>, vector<1x8x128xf32>,
    %c8_i32 = arith.constant 8 : i32
    return
  }
  func.func @transform_0(%arg0: i32, %arg1: i32) -> (i32, i32, i32) {
    %c0_i32 = arith.constant 0 : i32
    %c0_i32_0 = arith.constant 0 : i32
    return %arg1, %arg0, %c0_i32 : i32, i32, i32
  }
  func.func @transform_1(%arg0: i32, %arg1: i32) -> (i32, i32) {
    %c0_i32 = arith.constant 0 : i32
    %c0_i32_0 = arith.constant 0 : i32
    %c0_i32_1 = arith.constant 0 : i32
    return %c0_i32, %c0_i32_0 : i32, i32
  }
  func.func @transform_2(%arg0: i32, %arg1: i32) -> (i32, i32) {
    %c0_i32 = arith.constant 0 : i32
    %c0_i32_0 = arith.constant 0 : i32
    %c0_i32_1 = arith.constant 0 : i32
    return %c0_i32, %c0_i32_0 : i32, i32
  }
  func.func @transform_3(%arg0: i32, %arg1: i32) -> (i32, i32) {
    %c0_i32 = arith.constant 0 : i32
    %c0_i32_0 = arith.constant 0 : i32
    %c0_i32_1 = arith.constant 0 : i32
    return %c0_i32, %c0_i32_0 : i32, i32
  }
  func.func @transform_4(%arg0: i32, %arg1: i32) -> (i32, i32, i32) {
    %c0_i32 = arith.constant 0 : i32
    %c0_i32_0 = arith.constant 0 : i32
    return %arg1, %arg0, %c0_i32 : i32, i32, i32
  }
}

</mosaic_0001>

<bundles_post_ra>
// kernel: generator_forward.1
= control target key start
LH: loop header
LB: loop body
LE: loop exit
PB: predicated region body
PF: predicated region fallthrough
CT: control target
= control target key end

     0   :  { %v1495_v48 = vmov 0.0   ;;  %v1496_v54 = vmov 384.0   ;;  %s2615_s1 = inlined_call_operand.vmem [shape: f32[128,384], index: 1, kind: input, shape index: {}]   ;;  %s2616_s3 = inlined_call_operand.vmem [shape: f32[1,384], index: 3, kind: input, shape index: {}]   ;;  %s2617_s2 = inlined_call_operand.vmem [shape: f32[1,384], index: 2, kind: input, shape index: {}]   ;;  %s2618_s0 = inlined_call_operand.vmem [shape: f32[8,8,384], index: 0, kind: input, shape index: {}]   ;;  %s2619_s4 = inlined_call_operand.vmem [shape: f32[8,8,128], index: 4, kind: output, shape index: {}]  }
   0x1   :  { %v1525_v0 = vld [vmem:[%s2615_s1 + $0x178] sm:$0xff]  ;;  %v1530_v1 = vld [vmem:[%s2615_s1 + $0x160] sm:$0xff]  ;;  %v1535_v2 = vld [vmem:[%s2615_s1 + $0x168] sm:$0xff]  ;;  %1349 = vrcp.f32 %v1496_v54 }
   0x2   :  { %116 = vmatpush.msra.mxu2 %v1525_v0  ;;  %76 = vmatpush.msra.mxu0 %v1535_v2  ;;  %v1542_v3 = vld [vmem:[%s2615_s1 + $0x170] sm:$0xff]  ;;  %v1553_v5 = vld [vmem:[%s2615_s1 + $0x148] sm:$0xff]  ;;  %v1558_v6 = vld [vmem:[%s2615_s1 + $0x158] sm:$0xff] }
   0x3   :  { %v1547_v4 = vld [vmem:[%s2615_s1 + $0x150] sm:$0xff]  ;;  %96 = vmatpush.msra.mxu1 %v1542_v3  ;;  %v1563_v7 = vld [vmem:[%s2615_s1 + $0x138] sm:$0xff]  ;;  %247 = vmatpush.msra.mxu3 %v1535_v2  ;;  %v1571_v8 = vld [vmem:[%s2615_s1 + $0x140] sm:$0xff] }
   0x4   :  { %117 = vmatpush.msra.mxu2 %v1530_v1  ;;  %77 = vmatpush.msra.mxu0 %v1547_v4  ;;  %v1577_v9 = vld [vmem:[%s2615_s1 + $0x130] sm:$0xff]  ;;  %v1582_v10 = vld [vmem:[%s2615_s1 + $0x120] sm:$0xff]  ;;  %v1590_v11 = vld [vmem:[%s2615_s1 + $0x128] sm:$0xff] }
   0x5   :  { %97 = vmatpush.msra.mxu1 %v1558_v6  ;;  %248 = vmatpush.msra.mxu3 %v1547_v4  ;;  %v1596_v12 = vld [vmem:[%s2615_s1 + $0x118] sm:$0xff]  ;;  %v1601_v13 = vld [vmem:[%s2615_s1 + $0x108] sm:$0xff]  ;;  %v1609_v14 = vld [vmem:[%s2615_s1 + $0x110] sm:$0xff] }
   0x6   :  { %118 = vmatpush.msra.mxu2 %v1553_v5  ;;  %78 = vmatpush.msra.mxu0 %v1563_v7  ;;  %v1615_v15 = vld [vmem:[%s2615_s1 + $0x100] sm:$0xff]  ;;  %v1620_v16 = vld [vmem:[%s2615_s1 + $0xf0] sm:$0xff]  ;;  %v1628_v17 = vld [vmem:[%s2615_s1 + $0xf8] sm:$0xff] }
   0x7   :  { %98 = vmatpush.msra.mxu1 %v1571_v8  ;;  %249 = vmatpush.msra.mxu3 %v1563_v7  ;;  %v1634_v18 = vld [vmem:[%s2615_s1 + $0xe8] sm:$0xff]  ;;  %v1639_v19 = vld [vmem:[%s2615_s1 + $0xd8] sm:$0xff]  ;;  %v1647_v20 = vld [vmem:[%s2615_s1 + $0xe0] sm:$0xff]  ;;  %v1350_v55 = vpop.eup %1349 }
   0x8   :  { %119 = vmatpush.msra.mxu2 %v1577_v9  ;;  %79 = vmatpush.msra.mxu0 %v1582_v10  ;;  %v1653_v21 = vld [vmem:[%s2615_s1 + $0xd0] sm:$0xff]  ;;  %v1658_v22 = vld [vmem:[%s2615_s1 + $0xc0] sm:$0xff]  ;;  %v1666_v23 = vld [vmem:[%s2615_s1 + $0xc8] sm:$0xff]  ;;  %v141_v56 = vmul.f32 384.0, %v1350_v55  ;;  %vm145_vm0 = vweird.f32 %v1350_v55 }
   0x9   :  { %99 = vmatpush.msra.mxu1 %v1590_v11  ;;  %250 = vmatpush.msra.mxu3 %v1582_v10  ;;  %v1672_v24 = vld [vmem:[%s2615_s1 + $0xb8] sm:$0xff]  ;;  %v1677_v25 = vld [vmem:[%s2615_s1 + $0xa8] sm:$0xff]  ;;  %v1685_v26 = vld [vmem:[%s2615_s1 + $0xb0] sm:$0xff] }
   0xa   :  { %120 = vmatpush.msra.mxu2 %v1596_v12  ;;  %80 = vmatpush.msra.mxu0 %v1601_v13  ;;  %v1691_v27 = vld [vmem:[%s2615_s1 + $0xa0] sm:$0xff]  ;;  %v1696_v28 = vld [vmem:[%s2615_s1 + $0x90] sm:$0xff]  ;;  %v1704_v29 = vld [vmem:[%s2615_s1 + $0x98] sm:$0xff]  ;;  %v142_v57 = vsub.f32 1.0, %v141_v56 }
   0xb   :  { %100 = vmatpush.msra.mxu1 %v1609_v14  ;;  %251 = vmatpush.msra.mxu3 %v1601_v13  ;;  %v1710_v30 = vld [vmem:[%s2615_s1 + $0x88] sm:$0xff]  ;;  %v1715_v31 = vld [vmem:[%s2615_s1 + $0x78] sm:$0xff]  ;;  %v1723_v32 = vld [vmem:[%s2615_s1 + $0x80] sm:$0xff] }
   0xc   :  { %121 = vmatpush.msra.mxu2 %v1615_v15  ;;  %81 = vmatpush.msra.mxu0 %v1620_v16  ;;  %v1729_v33 = vld [vmem:[%s2615_s1 + $0x70] sm:$0xff]  ;;  %v1734_v34 = vld [vmem:[%s2615_s1 + $0x60] sm:$0xff]  ;;  %v1742_v35 = vld [vmem:[%s2615_s1 + $0x68] sm:$0xff]  ;;  %v143_v58 = vmul.f32 %v1350_v55, %v142_v57 }
   0xd   :  { %101 = vmatpush.msra.mxu1 %v1628_v17  ;;  %252 = vmatpush.msra.mxu3 %v1620_v16  ;;  %v1748_v36 = vld [vmem:[%s2615_s1 + $0x58] sm:$0xff]  ;;  %v1753_v37 = vld [vmem:[%s2615_s1 + $0x48] sm:$0xff]  ;;  %v1761_v38 = vld [vmem:[%s2615_s1 + $0x50] sm:$0xff] }
   0xe   :  { %122 = vmatpush.msra.mxu2 %v1634_v18  ;;  %82 = vmatpush.msra.mxu0 %v1639_v19  ;;  %2665 = vst [vmem:[#allocation3_spill] sm:$0xff] %v1761_v38  ;;  %v1767_v39 = vld [vmem:[%s2615_s1 + $0x40] sm:$0xff]  ;;  %v1772_v40 = vld [vmem:[%s2615_s1 + $0x30] sm:$0xff]  ;;  %v1780_v41 = vld [vmem:[%s2615_s1 + $0x38] sm:$0xff]  ;;  %v144_v59 = vadd.f32 %v1350_v55, %v143_v58 }
   0xf   :  { %102 = vmatpush.msra.mxu1 %v1647_v20  ;;  %253 = vmatpush.msra.mxu3 %v1639_v19  ;;  %2666 = vst [vmem:[#allocation4_spill] sm:$0xff] %v1767_v39  ;;  %v1786_v42 = vld [vmem:[%s2615_s1 + $0x28] sm:$0xff]  ;;  %v1791_v43 = vld [vmem:[%s2615_s1 + $0x18] sm:$0xff]  ;;  %v1799_v44 = vld [vmem:[%s2615_s1 + $0x20] sm:$0xff] }
  0x10   :  { %123 = vmatpush.msra.mxu2 %v1653_v21  ;;  %83 = vmatpush.msra.mxu0 %v1658_v22  ;;  %2667 = vst [vmem:[#allocation5_spill] sm:$0xff] %v1772_v40  ;;  %v1805_v45 = vld [vmem:[%s2615_s1 + $0x10] sm:$0xff]  ;;  %v1810_v46 = vld [vmem:[%s2615_s1] sm:$0xff]  ;;  %v1818_v47 = vld [vmem:[%s2615_s1 + $0x8] sm:$0xff]  ;;  %v1938_v60 = vsel %vm145_vm0, %v1350_v55, %v144_v59 }
  0x11   :  { %103 = vmatpush.msra.mxu1 %v1666_v23  ;;  %254 = vmatpush.msra.mxu3 %v1658_v22  ;;  %2668 = vst [vmem:[#allocation6_spill] sm:$0xff] %v1780_v41 }
  0x12   :  { %124 = vmatpush.msra.mxu2 %v1672_v24  ;;  %84 = vmatpush.msra.mxu0 %v1677_v25  ;;  %2669 = vst [vmem:[#allocation7_spill] sm:$0xff] %v1786_v42 }
  0x13   :  { %104 = vmatpush.msra.mxu1 %v1685_v26  ;;  %255 = vmatpush.msra.mxu3 %v1677_v25  ;;  %2670 = vst [vmem:[#allocation8_spill] sm:$0xff] %v1791_v43 }
  0x14   :  { %125 = vmatpush.msra.mxu2 %v1691_v27  ;;  %85 = vmatpush.msra.mxu0 %v1696_v28  ;;  %2671 = vst [vmem:[#allocation9_spill] sm:$0xff] %v1799_v44 }
  0x15   :  { %105 = vmatpush.msra.mxu1 %v1704_v29  ;;  %256 = vmatpush.msra.mxu3 %v1696_v28  ;;  %2672 = vst [vmem:[#allocation10_spill] sm:$0xff] %v1805_v45 }
  0x16   :  { %126 = vmatpush.msra.mxu2 %v1710_v30  ;;  %86 = vmatpush.msra.mxu0 %v1715_v31  ;;  %2673 = vst [vmem:[#allocation11_spill] sm:$0xff] %v1810_v46 }
  0x17   :  { %106 = vmatpush.msra.mxu1 %v1723_v32  ;;  %257 = vmatpush.msra.mxu3 %v1715_v31  ;;  %2674 = vst [vmem:[#allocation12_spill] sm:$0xff] %v1818_v47 }
  0x18   :  { %127 = vmatpush.msra.mxu2 %v1729_v33  ;;  %87 = vmatpush.msra.mxu0 %v1734_v34  ;;  %2675 = vst [vmem:[#allocation13_spill] sm:$0xff] %v1938_v60 }
  0x19   :  { %107 = vmatpush.msra.mxu1 %v1742_v35  ;;  %258 = vmatpush.msra.mxu3 %v1734_v34 }
  0x1a   :  { %128 = vmatpush.msra.mxu2 %v1748_v36  ;;  %88 = vmatpush.msra.mxu0 %v1753_v37 }
  0x1b   :  { %108 = vmatpush.msra.mxu1 %v1761_v38  ;;  %259 = vmatpush.msra.mxu3 %v1753_v37 }
  0x1c   :  { %129 = vmatpush.msra.mxu2 %v1767_v39  ;;  %89 = vmatpush.msra.mxu0 %v1772_v40 }
  0x1d   :  { %109 = vmatpush.msra.mxu1 %v1780_v41  ;;  %260 = vmatpush.msra.mxu3 %v1772_v40 }
  0x1e   :  { %130 = vmatpush.msra.mxu2 %v1786_v42  ;;  %90 = vmatpush.msra.mxu0 %v1791_v43 }
  0x1f   :  { %110 = vmatpush.msra.mxu1 %v1799_v44  ;;  %261 = vmatpush.msra.mxu3 %v1791_v43 }
  0x20   :  { %131 = vmatpush.msra.mxu2 %v1805_v45  ;;  %91 = vmatpush.msra.mxu0 %v1810_v46 }
  0x21   :  { %132 = vmatmul.f32.vlgmr.msra.gmra.mxu2 %v1495_v48  ;;  %111 = vmatpush.msra.mxu1 %v1818_v47 }
  0x22   :  { %92 = vmatmul.f32.vlgmr.msra.gmra.mxu0 %v1495_v48  ;;  %112 = vmatmul.f32.vlgmr.msra.gmra.mxu1 %v1495_v48 }
  0x23   :  { %267 = vmatpush.msrb.mxu0 %v1542_v3  ;;  %287 = vmatpush.msrb.mxu1 %v1525_v0 }
  0x24   :  { %262 = vmatpush.msra.mxu3 %v1810_v46  ;;  %398 = vmatpush.msrb.mxu2 %v1535_v2 }
  0x25   :  { %268 = vmatpush.msrb.mxu0 %v1558_v6  ;;  %288 = vmatpush.msrb.mxu1 %v1530_v1 }
  0x26   :  { %418 = vmatpush.msrb.mxu3 %v1542_v3  ;;  %399 = vmatpush.msrb.mxu2 %v1547_v4 }
  0x27   :  { %269 = vmatpush.msrb.mxu0 %v1571_v8  ;;  %289 = vmatpush.msrb.mxu1 %v1553_v5 }
  0x28   :  { %419 = vmatpush.msrb.mxu3 %v1558_v6  ;;  %400 = vmatpush.msrb.mxu2 %v1563_v7 }
  0x29   :  { %270 = vmatpush.msrb.mxu0 %v1590_v11  ;;  %290 = vmatpush.msrb.mxu1 %v1577_v9 }
  0x2a   :  { %420 = vmatpush.msrb.mxu3 %v1571_v8  ;;  %401 = vmatpush.msrb.mxu2 %v1582_v10 }
  0x2b   :  { %271 = vmatpush.msrb.mxu0 %v1609_v14  ;;  %291 = vmatpush.msrb.mxu1 %v1596_v12 }
  0x2c   :  { %421 = vmatpush.msrb.mxu3 %v1590_v11  ;;  %402 = vmatpush.msrb.mxu2 %v1601_v13 }
  0x2d   :  { %272 = vmatpush.msrb.mxu0 %v1628_v17  ;;  %292 = vmatpush.msrb.mxu1 %v1615_v15 }
  0x2e   :  { %422 = vmatpush.msrb.mxu3 %v1609_v14  ;;  %403 = vmatpush.msrb.mxu2 %v1620_v16 }
  0x2f   :  { %273 = vmatpush.msrb.mxu0 %v1647_v20  ;;  %293 = vmatpush.msrb.mxu1 %v1634_v18 }
  0x30   :  { %423 = vmatpush.msrb.mxu3 %v1628_v17  ;;  %404 = vmatpush.msrb.mxu2 %v1639_v19 }
  0x31   :  { %274 = vmatpush.msrb.mxu0 %v1666_v23  ;;  %294 = vmatpush.msrb.mxu1 %v1653_v21 }
  0x32   :  { %424 = vmatpush.msrb.mxu3 %v1647_v20  ;;  %405 = vmatpush.msrb.mxu2 %v1658_v22 }
  0x33   :  { %275 = vmatpush.msrb.mxu0 %v1685_v26  ;;  %295 = vmatpush.msrb.mxu1 %v1672_v24 }
  0x34   :  { %425 = vmatpush.msrb.mxu3 %v1666_v23  ;;  %406 = vmatpush.msrb.mxu2 %v1677_v25 }
  0x35   :  { %276 = vmatpush.msrb.mxu0 %v1704_v29  ;;  %296 = vmatpush.msrb.mxu1 %v1691_v27 }
  0x36   :  { %426 = vmatpush.msrb.mxu3 %v1685_v26  ;;  %407 = vmatpush.msrb.mxu2 %v1696_v28 }
  0x37   :  { %277 = vmatpush.msrb.mxu0 %v1723_v32  ;;  %297 = vmatpush.msrb.mxu1 %v1710_v30 }
  0x38   :  { %427 = vmatpush.msrb.mxu3 %v1704_v29  ;;  %408 = vmatpush.msrb.mxu2 %v1715_v31 }
  0x39   :  { %278 = vmatpush.msrb.mxu0 %v1742_v35  ;;  %298 = vmatpush.msrb.mxu1 %v1729_v33 }
  0x3a   :  { %428 = vmatpush.msrb.mxu3 %v1723_v32  ;;  %409 = vmatpush.msrb.mxu2 %v1734_v34 }
  0x3b   :  { %279 = vmatpush.msrb.mxu0 %v1761_v38  ;;  %299 = vmatpush.msrb.mxu1 %v1748_v36 }
  0x3c   :  { %429 = vmatpush.msrb.mxu3 %v1742_v35  ;;  %410 = vmatpush.msrb.mxu2 %v1753_v37 }
  0x3d   :  { %280 = vmatpush.msrb.mxu0 %v1780_v41  ;;  %300 = vmatpush.msrb.mxu1 %v1767_v39 }
  0x3e   :  { %430 = vmatpush.msrb.mxu3 %v1761_v38  ;;  %411 = vmatpush.msrb.mxu2 %v1772_v40 }
  0x3f   :  { %281 = vmatpush.msrb.mxu0 %v1799_v44  ;;  %301 = vmatpush.msrb.mxu1 %v1786_v42 }
  0x40   :  { %431 = vmatpush.msrb.mxu3 %v1780_v41  ;;  %412 = vmatpush.msrb.mxu2 %v1791_v43 }
  0x41   :  { %282 = vmatpush.msrb.mxu0 %v1818_v47  ;;  %302 = vmatpush.msrb.mxu1 %v1805_v45 }
  0x42   :  { %432 = vmatpush.msrb.mxu3 %v1799_v44  ;;  %413 = vmatpush.msrb.mxu2 %v1810_v46 }
  0x43   :  { %438 = vmatpush.msra.mxu0 %v1525_v0  ;;  %549 = vmatpush.msra.mxu1 %v1535_v2 }
  0x44   :  { %433 = vmatpush.msrb.mxu3 %v1818_v47  ;;  %569 = vmatpush.msra.mxu2 %v1542_v3 }
  0x45   :  { %439 = vmatpush.msra.mxu0 %v1530_v1  ;;  %550 = vmatpush.msra.mxu1 %v1547_v4 }
  0x46   :  { %570 = vmatpush.msra.mxu2 %v1558_v6 }
  0x47   :  { %440 = vmatpush.msra.mxu0 %v1553_v5  ;;  %551 = vmatpush.msra.mxu1 %v1563_v7 }
  0x48   :  { %571 = vmatpush.msra.mxu2 %v1571_v8 }
  0x49   :  { %441 = vmatpush.msra.mxu0 %v1577_v9  ;;  %552 = vmatpush.msra.mxu1 %v1582_v10 }
  0x4a   :  { %572 = vmatpush.msra.mxu2 %v1590_v11 }
  0x4b   :  { %442 = vmatpush.msra.mxu0 %v1596_v12  ;;  %553 = vmatpush.msra.mxu1 %v1601_v13 }
  0x4c   :  { %573 = vmatpush.msra.mxu2 %v1609_v14 }
  0x4d   :  { %443 = vmatpush.msra.mxu0 %v1615_v15  ;;  %554 = vmatpush.msra.mxu1 %v1620_v16 }
  0x4e   :  { %574 = vmatpush.msra.mxu2 %v1628_v17 }
  0x4f   :  { %444 = vmatpush.msra.mxu0 %v1634_v18  ;;  %555 = vmatpush.msra.mxu1 %v1639_v19 }
  0x50   :  { %575 = vmatpush.msra.mxu2 %v1647_v20 }
  0x51   :  { %445 = vmatpush.msra.mxu0 %v1653_v21  ;;  %556 = vmatpush.msra.mxu1 %v1658_v22 }
  0x52   :  { %576 = vmatpush.msra.mxu2 %v1666_v23 }
  0x53   :  { %446 = vmatpush.msra.mxu0 %v1672_v24  ;;  %557 = vmatpush.msra.mxu1 %v1677_v25 }
  0x54   :  { %577 = vmatpush.msra.mxu2 %v1685_v26 }
  0x55   :  { %447 = vmatpush.msra.mxu0 %v1691_v27  ;;  %558 = vmatpush.msra.mxu1 %v1696_v28 }
  0x56   :  { %578 = vmatpush.msra.mxu2 %v1704_v29 }
  0x57   :  { %448 = vmatpush.msra.mxu0 %v1710_v30  ;;  %559 = vmatpush.msra.mxu1 %v1715_v31 }
  0x58   :  { %579 = vmatpush.msra.mxu2 %v1723_v32 }
  0x59   :  { %449 = vmatpush.msra.mxu0 %v1729_v33  ;;  %560 = vmatpush.msra.mxu1 %v1734_v34 }
  0x5a   :  { %580 = vmatpush.msra.mxu2 %v1742_v35 }
  0x5b   :  { %450 = vmatpush.msra.mxu0 %v1748_v36  ;;  %561 = vmatpush.msra.mxu1 %v1753_v37 }
  0x5c   :  { %581 = vmatpush.msra.mxu2 %v1761_v38 }
  0x5d   :  { %451 = vmatpush.msra.mxu0 %v1767_v39  ;;  %562 = vmatpush.msra.mxu1 %v1772_v40 }
  0x5e   :  { %582 = vmatpush.msra.mxu2 %v1780_v41 }
  0x5f   :  { %452 = vmatpush.msra.mxu0 %v1786_v42  ;;  %563 = vmatpush.msra.mxu1 %v1791_v43 }
  0x60   :  { %583 = vmatpush.msra.mxu2 %v1799_v44 }
  0x61   :  { %453 = vmatpush.msra.mxu0 %v1805_v45  ;;  %564 = vmatpush.msra.mxu1 %v1810_v46 }
  0x62   :  { %584 = vmatpush.msra.mxu2 %v1818_v47 }
  0x9f   :  { %v93_v49 = vpop.f32.mrf.mxu0  ;;  %v113_v50 = vpop.f32.mrf.mxu1 }
  0xa0   :  { %v136_v51 = vadd.f32 %v113_v50, %v93_v49 }
  0xa4   :  { %v133_v52 = vpop.f32.mrf.mxu2 }
  0xa5   :  { %v137_v53 = vadd.f32 %v136_v51, %v133_v52 }
  0xa7   :  { %138 = vadd.xlane.f32.xlu0 %v137_v53 }
 0x11a   :  { %v139_v61 = vpop.xlane.xlu0 %138 }
 0x11b   :  { %v147_v62 = vmul.f32 %v1938_v60, %v139_v61 }
 0x11d   :  { %v148_v63 = vsub.f32 %v93_v49, %v147_v62  ;;  %v149_v48 = vsub.f32 %v113_v50, %v147_v62  ;;  %v150_v47 = vsub.f32 %v133_v52, %v147_v62  ;;  %v71_v49 = vld [vmem:[%s2616_s3] sm:$0x7] }
 0x11e   :  { %v1950_v52 = vperm.slane %v71_v49, 1  ;;  %v1966_v40 = vperm.slane %v71_v49, 2 }
 0x11f   :  { %v151_v46 = vmul.f32 %v148_v63, %v148_v63  ;;  %v152_v45 = vmul.f32 %v149_v48, %v149_v48  ;;  %v153_v51 = vmul.f32 %v150_v47, %v150_v47 }
 0x120   :  { %2677 = vst [vmem:[#allocation15_spill] sm:$0xff] %v1950_v52 }
 0x121   :  { %v154_v53 = vadd.f32 %v152_v45, %v151_v46  ;;  %v70_v45 = vld [vmem:[%s2617_s2] sm:$0x7]  ;;  %v1948_v46 = vperm.slane %v71_v49, 0 }
 0x122   :  { %v1952_v62 = vperm.slane %v70_v45, 0 }
 0x123   :  { %v155_v44 = vadd.f32 %v154_v53, %v153_v51  ;;  %2676 = vst [vmem:[#allocation14_spill] sm:$0xff] %v1948_v46  ;;  %v1954_v51 = vperm.slane %v70_v45, 1 }
 0x124   :  { %2678 = vst [vmem:[#allocation16_spill] sm:$0xff] %v1952_v62 }
 0x125   :  { %156 = vadd.xlane.f32.xlu0 %v155_v44 }
 0x198   :  { %v157_v54 = vpop.xlane.xlu0 %156 }
 0x199   :  { %v158_v56 = vmul.f32 %v157_v54, %v1938_v60 }
 0x19b   :  { %v159_v57 = vadd.f32 1e-05, %v158_v56 }
 0x19d   :  { %1351 = vrsqrt.f32 %v159_v57  ;;  %vm166_vm2 = vweird.f32 %v159_v57 }
 0x1a3   :  { %v1352_v58 = vpop.eup %1351 }
 0x1a4   :  { %v161_v55 = vmul.f32 %v1352_v58, %v159_v57  ;;  %vm167_vm1 = vweird.f32 %v1352_v58  ;;  %v73_v57 = vld [vmem:[%s2618_s0] sm:$0xff] }
 0x1a5   :  { %vm168_vm3 = vmor %vm166_vm2, %vm167_vm1 }
 0x1a6   :  { %v162_v59 = vmul.f32 %v1352_v58, %v161_v55  ;;  %v74_v55 = vld [vmem:[%s2618_s0 + $0x8] sm:$0xff] }
 0x1a8   :  { %v163_v43 = vmul.f32 0.5, %v162_v59 }
 0x1aa   :  { %v164_v50 = vsub.f32 1.5, %v163_v43 }
 0x1ac   :  { %v165_v44 = vmul.f32 %v1352_v58, %v164_v50 }
 0x1ae   :  { %v169_v61 = vsel %vm168_vm3, %v1352_v58, %v165_v44 }
 0x1af   :  { %v170_v53 = vmul.f32 %v169_v61, %v148_v63  ;;  %v171_v54 = vmul.f32 %v169_v61, %v149_v48 }
 0x1b1   :  { %v180_v43 = vmul.f32 %v1948_v46, %v170_v53  ;;  %v181_v56 = vmul.f32 %v1950_v52, %v171_v54 }
 0x1b3   :  { %v190_v58 = vadd.f32 %v1952_v62, %v180_v43  ;;  %v191_v59 = vadd.f32 %v1954_v51, %v181_v56  ;;  %v172_v43 = vmul.f32 %v169_v61, %v150_v47 }
 0x1b5   :  { %v193_v50 = vadd.f32 %v190_v58, %v73_v57  ;;  %v213_v44 = vadd.f32 %v191_v59, %v74_v55  ;;  %v1968_v55 = vperm.slane %v70_v45, 2  ;;  %v182_v59 = vmul.f32 %v1966_v40, %v172_v43 }
 0x1b7   :  { %v1303_v63 = vmul.f32 -1.442695, %v193_v50  ;;  %v1304_v48 = vmul.f32 -1.442695, %v213_v44  ;;  %v192_v49 = vadd.f32 %v1968_v55, %v182_v59 }
 0x1b9   :  { %1353 = vpow2.f32 %v1303_v63 }
 0x1ba   :  { %1355 = vpow2.f32 %v1304_v48 }
 0x1bf   :  { %v1354_v53 = vpop.eup %1353 }
 0x1c0   :  { %v1356_v54 = vpop.eup %1355  ;;  %v197_v52 = vadd.f32 1.0, %v1354_v53 }
 0x1c1   :  { %v217_v46 = vadd.f32 1.0, %v1356_v54 }
 0x1c2   :  { %1357 = vrcp.f32 %v197_v52  ;;  %vm203_vm9 = vweird.f32 %v197_v52  ;;  %v207_v43 = vand.u32 2147483647, %v197_v52 }
 0x1c3   :  { %1359 = vrcp.f32 %v217_v46  ;;  %v229_v58 = vand.u32 2147483648, %v217_v46  ;;  %v227_v44 = vand.u32 2147483647, %v217_v46  ;;  %vm223_vm5 = vweird.f32 %v217_v46 }
 0x1c4   :  { %vm208_vm11 = vcmp.eq.f32.partialorder %v207_v43, 8.507059e+37 }
 0x1c5   :  { %v230_v53 = vor.u32 1.1754944e-38, %v229_v58  ;;  %vm228_vm7 = vcmp.eq.f32.partialorder %v227_v44, 8.507059e+37 }
 0x1c8   :  { %v1358_v60 = vpop.eup %1357 }
 0x1c9   :  { %v1360_v42 = vpop.eup %1359  ;;  %v199_v41 = vmul.f32 %v1358_v60, %v197_v52  ;;  %vm204_vm8 = vweird.f32 %v1358_v60 }
 0x1ca   :  { %v219_v62 = vmul.f32 %v1360_v42, %v217_v46  ;;  %vm224_vm4 = vweird.f32 %v1360_v42  ;;  %vm205_vm10 = vmor %vm203_vm9, %vm204_vm8 }
 0x1cb   :  { %v200_v56 = vsub.f32 1.0, %v199_v41  ;;  %vm225_vm6 = vmor %vm223_vm5, %vm224_vm4  ;;  %v75_v41 = vld [vmem:[%s2618_s0 + $0x10] sm:$0xff] }
 0x1cc   :  { %v220_v57 = vsub.f32 1.0, %v219_v62  ;;  %v209_v62 = vand.u32 2147483648, %v197_v52  ;;  %v2680_v52 = vld [vmem:[#allocation6_spill] sm:$0xff] }
 0x1cd   :  { %v201_v63 = vmul.f32 %v1358_v60, %v200_v56 }
 0x1ce   :  { %v221_v50 = vmul.f32 %v1360_v42, %v220_v57  ;;  %v210_v57 = vor.u32 1.1754944e-38, %v209_v62 }
 0x1cf   :  { %v202_v45 = vadd.f32 %v1358_v60, %v201_v63  ;;  %v2681_v63 = vld [vmem:[#allocation7_spill] sm:$0xff] }
 0x1d0   :  { %v222_v48 = vadd.f32 %v1360_v42, %v221_v50 }
 0x1d1   :  { %v206_v46 = vsel %vm205_vm10, %v1358_v60, %v202_v45  ;;  %v2679_v60 = vld [vmem:[#allocation5_spill] sm:$0xff] }
 0x1d2   :  { %v226_v54 = vsel %vm225_vm6, %v1360_v42, %v222_v48  ;;  %v211_v58 = vsel %vm208_vm11, %v210_v57, %v206_v46  ;;  %v2687_v57 = vld [vmem:[#allocation13_spill] sm:$0xff] }
 0x1d3   :  { %v231_v47 = vsel %vm228_vm7, %v230_v53, %v226_v54  ;;  %v236_v42 = vsub.f32 1.0, %v211_v58  ;;  %v238_v44 = vmul.f32 0.0, %v211_v58  ;;  %v2682_v53 = vld [vmem:[#allocation8_spill] sm:$0xff]  ;;  %v2684_v54 = vld [vmem:[#allocation10_spill] sm:$0xff] }
 0x1d4   :  { %v233_v61 = vmul.f32 %v231_v47, %v192_v49  ;;  %v2683_v49 = vld [vmem:[#allocation9_spill] sm:$0xff]  ;;  %v2686_v47 = vld [vmem:[#allocation12_spill] sm:$0xff] }
 0x1d6   :  { %v234_v56 = vadd.f32 %v233_v61, %v75_v41  ;;  %v2685_v41 = vld [vmem:[#allocation11_spill] sm:$0xff] }
 0x1d8   :  { %1361 = vtanh.f32 %v234_v56 }
 0x1de   :  { %v1362_v59 = vpop.eup %1361 }
 0x1df   :  { %v237_v50 = vmul.f32 %v1362_v59, %v236_v42 }
 0x1e1   :  { %v1975_v48 = vadd.f32 %v238_v44, %v237_v50 }
 0x1e3   :  { %241 = vst [vmem:[%s2619_s4] sm:$0xff] %v1975_v48  ;;  %263 = vmatmul.f32.vlgmr.msra.gmra.mxu3 %v1975_v48  ;;  %283 = vmatmul.f32.vlgmr.msrb.gmra.mxu0 %v1975_v48 }
 0x1e4   :  { %303 = vmatmul.f32.vlgmr.msrb.gmra.mxu1 %v1975_v48  ;;  %589 = vmatpush.msra.mxu3 %v1525_v0 }
 0x1e5   :  { %700 = vmatpush.msrb.mxu0 %v1535_v2  ;;  %720 = vmatpush.msrb.mxu1 %v1542_v3 }
 0x1e6   :  { %590 = vmatpush.msra.mxu3 %v1530_v1 }
 0x1e7   :  { %701 = vmatpush.msrb.mxu0 %v1547_v4  ;;  %721 = vmatpush.msrb.mxu1 %v1558_v6 }
 0x1e8   :  { %591 = vmatpush.msra.mxu3 %v1553_v5 }
 0x1e9   :  { %702 = vmatpush.msrb.mxu0 %v1563_v7  ;;  %722 = vmatpush.msrb.mxu1 %v1571_v8 }
 0x1ea   :  { %592 = vmatpush.msra.mxu3 %v1577_v9 }
 0x1eb   :  { %703 = vmatpush.msrb.mxu0 %v1582_v10  ;;  %723 = vmatpush.msrb.mxu1 %v1590_v11 }
 0x1ec   :  { %593 = vmatpush.msra.mxu3 %v1596_v12 }
 0x1ed   :  { %704 = vmatpush.msrb.mxu0 %v1601_v13  ;;  %724 = vmatpush.msrb.mxu1 %v1609_v14 }
 0x1ee   :  { %594 = vmatpush.msra.mxu3 %v1615_v15 }
 0x1ef   :  { %705 = vmatpush.msrb.mxu0 %v1620_v16  ;;  %725 = vmatpush.msrb.mxu1 %v1628_v17 }
 0x1f0   :  { %595 = vmatpush.msra.mxu3 %v1634_v18 }
 0x1f1   :  { %706 = vmatpush.msrb.mxu0 %v1639_v19  ;;  %726 = vmatpush.msrb.mxu1 %v1647_v20 }
 0x1f2   :  { %596 = vmatpush.msra.mxu3 %v1653_v21 }
 0x1f3   :  { %707 = vmatpush.msrb.mxu0 %v1658_v22  ;;  %727 = vmatpush.msrb.mxu1 %v1666_v23 }
 0x1f4   :  { %597 = vmatpush.msra.mxu3 %v1672_v24 }
 0x1f5   :  { %708 = vmatpush.msrb.mxu0 %v1677_v25  ;;  %728 = vmatpush.msrb.mxu1 %v1685_v26 }
 0x1f6   :  { %598 = vmatpush.msra.mxu3 %v1691_v27 }
 0x1f7   :  { %709 = vmatpush.msrb.mxu0 %v1696_v28  ;;  %729 = vmatpush.msrb.mxu1 %v1704_v29 }
 0x1f8   :  { %599 = vmatpush.msra.mxu3 %v1710_v30 }
 0x1f9   :  { %710 = vmatpush.msrb.mxu0 %v1715_v31  ;;  %730 = vmatpush.msrb.mxu1 %v1723_v32 }
 0x1fa   :  { %600 = vmatpush.msra.mxu3 %v1729_v33 }
 0x1fb   :  { %711 = vmatpush.msrb.mxu0 %v1734_v34  ;;  %731 = vmatpush.msrb.mxu1 %v1742_v35 }
 0x1fc   :  { %601 = vmatpush.msra.mxu3 %v1748_v36 }
 0x1fd   :  { %712 = vmatpush.msrb.mxu0 %v1753_v37  ;;  %732 = vmatpush.msrb.mxu1 %v1761_v38 }
 0x1fe   :  { %602 = vmatpush.msra.mxu3 %v1767_v39 }
 0x1ff   :  { %713 = vmatpush.msrb.mxu0 %v2679_v60  ;;  %733 = vmatpush.msrb.mxu1 %v2680_v52 }
 0x200   :  { %603 = vmatpush.msra.mxu3 %v2681_v63 }
 0x201   :  { %714 = vmatpush.msrb.mxu0 %v2682_v53  ;;  %734 = vmatpush.msrb.mxu1 %v2683_v49 }
 0x202   :  { %604 = vmatpush.msra.mxu3 %v2684_v54 }
 0x203   :  { %715 = vmatpush.msrb.mxu0 %v2685_v41  ;;  %735 = vmatpush.msrb.mxu1 %v2686_v47 }
 0x260   :  { %v284_v45 = vpop.f32.mrf.mxu0 }
 0x261   :  { %v304_v43 = vpop.f32.mrf.mxu1 }
 0x266   :  { %v264_v61 = vpop.f32.mrf.mxu3 }
 0x267   :  { %v307_v62 = vadd.f32 %v284_v45, %v264_v61 }
 0x269   :  { %v308_v56 = vadd.f32 %v307_v62, %v304_v43 }
 0x26b   :  { %309 = vadd.xlane.f32.xlu1 %v308_v56 }
 0x2de   :  { %v310_v46 = vpop.xlane.xlu1 %309 }
 0x2df   :  { %v311_v58 = vmul.f32 %v310_v46, %v2687_v57 }
 0x2e1   :  { %v312_v42 = vsub.f32 %v264_v61, %v311_v58  ;;  %v313_v59 = vsub.f32 %v284_v45, %v311_v58  ;;  %v314_v50 = vsub.f32 %v304_v43, %v311_v58 }
 0x2e3   :  { %v315_v44 = vmul.f32 %v312_v42, %v312_v42  ;;  %v316_v49 = vmul.f32 %v313_v59, %v313_v59  ;;  %v317_v53 = vmul.f32 %v314_v50, %v314_v50 }
 0x2e5   :  { %v318_v54 = vadd.f32 %v316_v49, %v315_v44  ;;  %v2688_v49 = vld [vmem:[#allocation14_spill] sm:$0xff] }
 0x2e7   :  { %v319_v63 = vadd.f32 %v318_v54, %v317_v53 }
 0x2e9   :  { %320 = vadd.xlane.f32.xlu1 %v319_v63  ;;  %v2689_v63 = vld [vmem:[#allocation15_spill] sm:$0xff] }
 0x35c   :  { %v321_v41 = vpop.xlane.xlu1 %320 }
 0x35d   :  { %v322_v47 = vmul.f32 %v321_v41, %v2687_v57  ;;  %v1305_v41 = vld [vmem:[%s2618_s0 + $0x18] sm:$0xff] }
 0x35f   :  { %v323_v52 = vadd.f32 1e-05, %v322_v47  ;;  %v1306_v47 = vld [vmem:[%s2618_s0 + $0x20] sm:$0xff] }
 0x361   :  { %1363 = vrsqrt.f32 %v323_v52  ;;  %vm330_vm13 = vweird.f32 %v323_v52 }
 0x367   :  { %v1364_v60 = vpop.eup %1363 }
 0x368   :  { %v325_v62 = vmul.f32 %v1364_v60, %v323_v52  ;;  %vm331_vm12 = vweird.f32 %v1364_v60 }
 0x369   :  { %vm332_vm14 = vmor %vm330_vm13, %vm331_vm12 }
 0x36a   :  { %v326_v56 = vmul.f32 %v1364_v60, %v325_v62 }
 0x36c   :  { %v327_v39 = vmul.f32 0.5, %v326_v56 }
 0x36e   :  { %v328_v38 = vsub.f32 1.5, %v327_v39  ;;  %v2690_v39 = vld [vmem:[#allocation16_spill] sm:$0xff] }
 0x370   :  { %v329_v61 = vmul.f32 %v1364_v60, %v328_v38 }
 0x372   :  { %v333_v45 = vsel %vm332_vm14, %v1364_v60, %v329_v61 }
 0x373   :  { %v334_v43 = vmul.f32 %v333_v45, %v312_v42  ;;  %v335_v46 = vmul.f32 %v333_v45, %v313_v59 }
 0x375   :  { %v337_v53 = vmul.f32 %v334_v43, %v2688_v49  ;;  %v338_v54 = vmul.f32 %v335_v46, %v2689_v63  ;;  %v336_v49 = vmul.f32 %v333_v45, %v314_v50  ;;  %v1307_v50 = vld [vmem:[%s2618_s0 + $0x28] sm:$0xff] }
 0x377   :  { %v340_v58 = vadd.f32 %v337_v53, %v2690_v39  ;;  %v341_v38 = vadd.f32 %v338_v54, %v1954_v51 }
 0x379   :  { %v343_v52 = vadd.f32 %v1305_v41, %v340_v58  ;;  %v363_v60 = vadd.f32 %v1306_v47, %v341_v38  ;;  %v339_v41 = vmul.f32 %v336_v49, %v1966_v40 }
 0x37b   :  { %v1308_v42 = vmul.f32 -1.442695, %v343_v52  ;;  %v1309_v59 = vmul.f32 -1.442695, %v363_v60 }
 0x37d   :  { %1365 = vpow2.f32 %v1308_v42  ;;  %v342_v42 = vadd.f32 %v339_v41, %v1968_v55 }
 0x37e   :  { %1367 = vpow2.f32 %v1309_v59 }
 0x383   :  { %v1366_v44 = vpop.eup %1365 }
 0x384   :  { %v1368_v62 = vpop.eup %1367  ;;  %v347_v56 = vadd.f32 1.0, %v1366_v44 }
 0x385   :  { %v367_v61 = vadd.f32 1.0, %v1368_v62 }
 0x386   :  { %1369 = vrcp.f32 %v347_v56  ;;  %vm353_vm4 = vweird.f32 %v347_v56 }
 0x387   :  { %1371 = vrcp.f32 %v367_v61  ;;  %v379_v54 = vand.u32 2147483648, %v367_v61  ;;  %v377_v58 = vand.u32 2147483647, %v367_v61  ;;  %vm373_vm0 = vweird.f32 %v367_v61 }
 0x389   :  { %v380_v60 = vor.u32 1.1754944e-38, %v379_v54  ;;  %vm378_vm2 = vcmp.eq.f32.partialorder %v377_v58, 8.507059e+37 }
 0x38c   :  { %v1370_v43 = vpop.eup %1369 }
 0x38d   :  { %v1372_v46 = vpop.eup %1371  ;;  %v349_v63 = vmul.f32 %v1370_v43, %v347_v56  ;;  %vm354_vm3 = vweird.f32 %v1370_v43 }
 0x38e   :  { %v369_v57 = vmul.f32 %v1372_v46, %v367_v61  ;;  %vm374_vm15 = vweird.f32 %v1372_v46  ;;  %vm355_vm5 = vmor %vm353_vm4, %vm354_vm3 }
 0x38f   :  { %v350_v53 = vsub.f32 1.0, %v349_v63  ;;  %vm375_vm1 = vmor %vm373_vm0, %vm374_vm15  ;;  %v359_v63 = vand.u32 2147483648, %v347_v56 }
 0x390   :  { %v370_v39 = vsub.f32 1.0, %v369_v57 }
 0x391   :  { %v351_v38 = vmul.f32 %v1370_v43, %v350_v53  ;;  %v360_v61 = vor.u32 1.1754944e-38, %v359_v63 }
 0x392   :  { %v371_v47 = vmul.f32 %v1372_v46, %v370_v39  ;;  %v357_v39 = vand.u32 2147483647, %v347_v56 }
 0x393   :  { %v352_v45 = vadd.f32 %v1370_v43, %v351_v38 }
 0x394   :  { %v372_v52 = vadd.f32 %v1372_v46, %v371_v47  ;;  %vm358_vm6 = vcmp.eq.f32.partialorder %v357_v39, 8.507059e+37 }
 0x395   :  { %v356_v62 = vsel %vm355_vm5, %v1370_v43, %v352_v45  ;;  %v2703_v43 = vld [vmem:[#allocation15_spill] sm:$0xff] }
 0x396   :  { %v376_v59 = vsel %vm375_vm1, %v1372_v46, %v372_v52  ;;  %v361_v53 = vsel %vm358_vm6, %v360_v61, %v356_v62  ;;  %v1311_v52 = vld [vmem:[%s2618_s0 + $0x30] sm:$0xff] }
 0x397   :  { %v381_v57 = vsel %vm378_vm2, %v380_v60, %v376_v59  ;;  %v386_v46 = vsub.f32 1.0, %v361_v53  ;;  %v388_v47 = vmul.f32 %v361_v53, %v1975_v48  ;;  %v2702_v48 = vld [vmem:[#allocation14_spill] sm:$0xff] }
 0x398   :  { %v383_v49 = vmul.f32 %v381_v57, %v342_v42  ;;  %v1312_v60 = vld [vmem:[%s2618_s0 + $0x38] sm:$0xff]  ;;  %v2704_v42 = vld [vmem:[#allocation16_spill] sm:$0xff] }
 0x39a   :  { %v384_v44 = vadd.f32 %v1307_v50, %v383_v49 }
 0x39c   :  { %1373 = vtanh.f32 %v384_v44 }
 0x3a2   :  { %v1374_v54 = vpop.eup %1373 }
 0x3a3   :  { %v387_v41 = vmul.f32 %v1374_v54, %v386_v46 }
 0x3a5   :  { %v2050_v58 = vadd.f32 %v388_v47, %v387_v41 }
 0x3a7   :  { %1310 = vst [vmem:[%s2619_s4 + $0x8] sm:$0xff] %v2050_v58  ;;  %414 = vmatmul.f32.vlgmr.msrb.gmra.mxu2 %v2050_v58  ;;  %434 = vmatmul.f32.vlgmr.msrb.gmra.mxu3 %v2050_v58 }
 0x3a8   :  { %454 = vmatmul.f32.vlgmr.msra.gmra.mxu0 %v2050_v58  ;;  %740 = vmatpush.msrb.mxu2 %v1525_v0  ;;  %v2691_v0 = vld [vmem:[#allocation3_spill] sm:$0xff] }
 0x3a9   :  { %851 = vmatpush.msrb.mxu3 %v1535_v2  ;;  %871 = vmatpush.msra.mxu0 %v1542_v3  ;;  %v2693_v2 = vld [vmem:[#allocation5_spill] sm:$0xff]  ;;  %v2694_v3 = vld [vmem:[#allocation6_spill] sm:$0xff] }
 0x3aa   :  { %741 = vmatpush.msrb.mxu2 %v1530_v1  ;;  %v2692_v1 = vld [vmem:[#allocation4_spill] sm:$0xff] }
 0x3ab   :  { %852 = vmatpush.msrb.mxu3 %v1547_v4  ;;  %872 = vmatpush.msra.mxu0 %v1558_v6  ;;  %v2695_v4 = vld [vmem:[#allocation7_spill] sm:$0xff]  ;;  %v2697_v6 = vld [vmem:[#allocation9_spill] sm:$0xff] }
 0x3ac   :  { %742 = vmatpush.msrb.mxu2 %v1553_v5  ;;  %v2696_v5 = vld [vmem:[#allocation8_spill] sm:$0xff] }
 0x3ad   :  { %853 = vmatpush.msrb.mxu3 %v1563_v7  ;;  %873 = vmatpush.msra.mxu0 %v1571_v8  ;;  %v2698_v7 = vld [vmem:[#allocation10_spill] sm:$0xff]  ;;  %v2699_v8 = vld [vmem:[#allocation11_spill] sm:$0xff] }
 0x3ae   :  { %743 = vmatpush.msrb.mxu2 %v1577_v9  ;;  %v2700_v9 = vld [vmem:[#allocation12_spill] sm:$0xff] }
 0x3af   :  { %854 = vmatpush.msrb.mxu3 %v1582_v10  ;;  %874 = vmatpush.msra.mxu0 %v1590_v11 }
 0x3b0   :  { %744 = vmatpush.msrb.mxu2 %v1596_v12 }
 0x3b1   :  { %855 = vmatpush.msrb.mxu3 %v1601_v13  ;;  %875 = vmatpush.msra.mxu0 %v1609_v14 }
 0x3b2   :  { %745 = vmatpush.msrb.mxu2 %v1615_v15 }
 0x3b3   :  { %856 = vmatpush.msrb.mxu3 %v1620_v16  ;;  %876 = vmatpush.msra.mxu0 %v1628_v17  ;;  %v2701_v16 = vld [vmem:[#allocation13_spill] sm:$0xff] }
 0x3b4   :  { %746 = vmatpush.msrb.mxu2 %v1634_v18 }
 0x3b5   :  { %857 = vmatpush.msrb.mxu3 %v1639_v19  ;;  %877 = vmatpush.msra.mxu0 %v1647_v20 }
 0x3b6   :  { %747 = vmatpush.msrb.mxu2 %v1653_v21 }
 0x3b7   :  { %858 = vmatpush.msrb.mxu3 %v1658_v22  ;;  %878 = vmatpush.msra.mxu0 %v1666_v23 }
 0x3b8   :  { %748 = vmatpush.msrb.mxu2 %v1672_v24 }
 0x3b9   :  { %859 = vmatpush.msrb.mxu3 %v1677_v25  ;;  %879 = vmatpush.msra.mxu0 %v1685_v26 }
 0x3ba   :  { %749 = vmatpush.msrb.mxu2 %v1691_v27 }
 0x3bb   :  { %860 = vmatpush.msrb.mxu3 %v1696_v28  ;;  %880 = vmatpush.msra.mxu0 %v1704_v29 }
 0x3bc   :  { %750 = vmatpush.msrb.mxu2 %v1710_v30 }
 0x3bd   :  { %861 = vmatpush.msrb.mxu3 %v1715_v31  ;;  %881 = vmatpush.msra.mxu0 %v1723_v32 }
 0x3be   :  { %751 = vmatpush.msrb.mxu2 %v1729_v33 }
 0x3bf   :  { %862 = vmatpush.msrb.mxu3 %v1734_v34  ;;  %882 = vmatpush.msra.mxu0 %v1742_v35 }
 0x3c0   :  { %752 = vmatpush.msrb.mxu2 %v1748_v36 }
 0x3c1   :  { %863 = vmatpush.msrb.mxu3 %v1753_v37  ;;  %883 = vmatpush.msra.mxu0 %v2691_v0 }
 0x3c2   :  { %753 = vmatpush.msrb.mxu2 %v2692_v1 }
 0x3c3   :  { %864 = vmatpush.msrb.mxu3 %v2693_v2  ;;  %884 = vmatpush.msra.mxu0 %v2694_v3 }
 0x3c4   :  { %754 = vmatpush.msrb.mxu2 %v2695_v4 }
 0x3c5   :  { %865 = vmatpush.msrb.mxu3 %v2696_v5  ;;  %885 = vmatpush.msra.mxu0 %v2697_v6 }
 0x3c6   :  { %755 = vmatpush.msrb.mxu2 %v2698_v7 }
 0x3c7   :  { %866 = vmatpush.msrb.mxu3 %v2699_v8  ;;  %886 = vmatpush.msra.mxu0 %v2700_v9 }
 0x425   :  { %v455_v13 = vpop.f32.mrf.mxu0 }
 0x42a   :  { %v415_v10 = vpop.f32.mrf.mxu2  ;;  %v435_v11 = vpop.f32.mrf.mxu3 }
 0x42b   :  { %v458_v12 = vadd.f32 %v435_v11, %v415_v10 }
 0x42d   :  { %v459_v14 = vadd.f32 %v458_v12, %v455_v13 }
 0x42f   :  { %460 = vadd.xlane.f32.xlu2 %v459_v14 }
 0x4a2   :  { %v461_v15 = vpop.xlane.xlu2 %460 }
 0x4a3   :  { %v462_v17 = vmul.f32 %v461_v15, %v2701_v16 }
 0x4a5   :  { %v463_v18 = vsub.f32 %v415_v10, %v462_v17  ;;  %v464_v19 = vsub.f32 %v435_v11, %v462_v17  ;;  %v465_v20 = vsub.f32 %v455_v13, %v462_v17  ;;  %v1313_v11 = vld [vmem:[%s2618_s0 + $0x40] sm:$0xff] }
 0x4a7   :  { %v466_v21 = vmul.f32 %v463_v18, %v463_v18  ;;  %v467_v22 = vmul.f32 %v464_v19, %v464_v19  ;;  %v468_v23 = vmul.f32 %v465_v20, %v465_v20 }
 0x4a9   :  { %v469_v24 = vadd.f32 %v467_v22, %v466_v21 }
 0x4ab   :  { %v470_v25 = vadd.f32 %v469_v24, %v468_v23 }
 0x4ad   :  { %471 = vadd.xlane.f32.xlu2 %v470_v25 }
 0x520   :  { %v472_v26 = vpop.xlane.xlu2 %471 }
 0x521   :  { %v473_v27 = vmul.f32 %v472_v26, %v2701_v16 }
 0x523   :  { %v474_v28 = vadd.f32 1e-05, %v473_v27  ;;  %v2137_v27 = vld [vmem:[%s2615_s1 + $0x178] sm:$0xff] }
 0x525   :  { %1375 = vrsqrt.f32 %v474_v28  ;;  %vm481_vm8 = vweird.f32 %v474_v28 }
 0x52b   :  { %v1376_v29 = vpop.eup %1375 }
 0x52c   :  { %v476_v30 = vmul.f32 %v1376_v29, %v474_v28  ;;  %vm482_vm7 = vweird.f32 %v1376_v29  ;;  %v2149_v28 = vld [vmem:[%s2615_s1 + $0x170] sm:$0xff] }
 0x52d   :  { %vm483_vm9 = vmor %vm481_vm8, %vm482_vm7 }
 0x52e   :  { %v477_v31 = vmul.f32 %v1376_v29, %v476_v30  ;;  %v2161_v30 = vld [vmem:[%s2615_s1 + $0x150] sm:$0xff] }
 0x530   :  { %v478_v32 = vmul.f32 0.5, %v477_v31  ;;  %v2167_v31 = vld [vmem:[%s2615_s1 + $0x158] sm:$0xff] }
 0x532   :  { %v479_v33 = vsub.f32 1.5, %v478_v32  ;;  %v2173_v32 = vld [vmem:[%s2615_s1 + $0x148] sm:$0xff] }
 0x534   :  { %v480_v34 = vmul.f32 %v1376_v29, %v479_v33  ;;  %v2179_v33 = vld [vmem:[%s2615_s1 + $0x138] sm:$0xff] }
 0x536   :  { %v484_v35 = vsel %vm483_vm9, %v1376_v29, %v480_v34  ;;  %v2155_v29 = vld [vmem:[%s2615_s1 + $0x160] sm:$0xff] }
 0x537   :  { %v485_v36 = vmul.f32 %v484_v35, %v463_v18  ;;  %v486_v37 = vmul.f32 %v484_v35, %v464_v19  ;;  %v487_v41 = vmul.f32 %v484_v35, %v465_v20  ;;  %v2185_v34 = vld [vmem:[%s2615_s1 + $0x140] sm:$0xff]  ;;  %v2191_v35 = vld [vmem:[%s2615_s1 + $0x130] sm:$0xff] }
 0x539   :  { %v488_v56 = vmul.f32 %v485_v36, %v2702_v48  ;;  %v489_v38 = vmul.f32 %v486_v37, %v2703_v43  ;;  %v490_v3 = vmul.f32 %v487_v41, %v1966_v40  ;;  %v2197_v36 = vld [vmem:[%s2615_s1 + $0x120] sm:$0xff]  ;;  %v2203_v37 = vld [vmem:[%s2615_s1 + $0x128] sm:$0xff]  ;;  %v2311_v41 = vld [vmem:[%s2615_s1 + $0x98] sm:$0xff] }
 0x53b   :  { %v491_v59 = vadd.f32 %v488_v56, %v2704_v42  ;;  %v492_v50 = vadd.f32 %v489_v38, %v1954_v51  ;;  %v493_v9 = vadd.f32 %v490_v3, %v1968_v55  ;;  %v2209_v56 = vld [vmem:[%s2615_s1 + $0x118] sm:$0xff]  ;;  %v2215_v38 = vld [vmem:[%s2615_s1 + $0x108] sm:$0xff]  ;;  %v2341_v3 = vld [vmem:[%s2615_s1 + $0x60] sm:$0xff] }
 0x53d   :  { %v494_v57 = vadd.f32 %v1311_v52, %v491_v59  ;;  %v514_v45 = vadd.f32 %v1312_v60, %v492_v50  ;;  %v2221_v52 = vld [vmem:[%s2615_s1 + $0x110] sm:$0xff]  ;;  %v2227_v60 = vld [vmem:[%s2615_s1 + $0x100] sm:$0xff]  ;;  %v2239_v50 = vld [vmem:[%s2615_s1 + $0xf8] sm:$0xff] }
 0x53e   :  { %v2233_v59 = vld [vmem:[%s2615_s1 + $0xf0] sm:$0xff] }
 0x53f   :  { %v1314_v49 = vmul.f32 -1.442695, %v494_v57  ;;  %v1315_v63 = vmul.f32 -1.442695, %v514_v45  ;;  %v2245_v57 = vld [vmem:[%s2615_s1 + $0xe8] sm:$0xff]  ;;  %v2251_v45 = vld [vmem:[%s2615_s1 + $0xd8] sm:$0xff] }
 0x541   :  { %1377 = vpow2.f32 %v1314_v49  ;;  %v2257_v49 = vld [vmem:[%s2615_s1 + $0xe0] sm:$0xff] }
 0x542   :  { %1379 = vpow2.f32 %v1315_v63  ;;  %v2263_v63 = vld [vmem:[%s2615_s1 + $0xd0] sm:$0xff] }
 0x547   :  { %v1378_v39 = vpop.eup %1377 }
 0x548   :  { %v1380_v44 = vpop.eup %1379  ;;  %v498_v62 = vadd.f32 1.0, %v1378_v39  ;;  %v2269_v39 = vld [vmem:[%s2615_s1 + $0xc0] sm:$0xff] }
 0x549   :  { %v518_v61 = vadd.f32 1.0, %v1380_v44  ;;  %v2275_v44 = vld [vmem:[%s2615_s1 + $0xc8] sm:$0xff] }
 0x54a   :  { %1381 = vrcp.f32 %v498_v62  ;;  %v510_v15 = vand.u32 2147483648, %v498_v62  ;;  %vm504_vm15 = vweird.f32 %v498_v62  ;;  %v508_v17 = vand.u32 2147483647, %v498_v62 }
 0x54b   :  { %1383 = vrcp.f32 %v518_v61  ;;  %v530_v2 = vand.u32 2147483648, %v518_v61  ;;  %v528_v5 = vand.u32 2147483647, %v518_v61  ;;  %vm524_vm11 = vweird.f32 %v518_v61 }
 0x54c   :  { %v511_v20 = vor.u32 1.1754944e-38, %v510_v15  ;;  %vm509_vm1 = vcmp.eq.f32.partialorder %v508_v17, 8.507059e+37  ;;  %v2413_v15 = vld [vmem:[%s2615_s1] sm:$0xff]  ;;  %v2419_v17 = vld [vmem:[%s2615_s1 + $0x8] sm:$0xff] }
 0x54d   :  { %v531_v8 = vor.u32 1.1754944e-38, %v530_v2  ;;  %vm529_vm13 = vcmp.eq.f32.partialorder %v528_v5, 8.507059e+37  ;;  %v2335_v2 = vld [vmem:[%s2615_s1 + $0x70] sm:$0xff]  ;;  %v2353_v5 = vld [vmem:[%s2615_s1 + $0x58] sm:$0xff]  ;;  %2716 = vst [vmem:[#allocation14_spill] sm:$0xff] %v2413_v15 }
 0x54e   :  { %2706 = vst [vmem:[#allocation4_spill] sm:$0xff] %v2353_v5 }
 0x54f   :  { %2717 = vst [vmem:[#allocation15_spill] sm:$0xff] %v2419_v17 }
 0x550   :  { %v1382_v53 = vpop.eup %1381 }
 0x551   :  { %v1384_v46 = vpop.eup %1383  ;;  %v500_v54 = vmul.f32 %v1382_v53, %v498_v62  ;;  %vm505_vm14 = vweird.f32 %v1382_v53  ;;  %v2281_v62 = vld [vmem:[%s2615_s1 + $0xb8] sm:$0xff] }
 0x552   :  { %v520_v47 = vmul.f32 %v1384_v46, %v518_v61  ;;  %vm525_vm10 = vweird.f32 %v1384_v46  ;;  %vm506_vm0 = vmor %vm504_vm15, %vm505_vm14  ;;  %v2287_v61 = vld [vmem:[%s2615_s1 + $0xa8] sm:$0xff] }
 0x553   :  { %v501_v0 = vsub.f32 1.0, %v500_v54  ;;  %vm526_vm12 = vmor %vm524_vm11, %vm525_vm10  ;;  %v2305_v54 = vld [vmem:[%s2615_s1 + $0x90] sm:$0xff] }
 0x554   :  { %v521_v1 = vsub.f32 1.0, %v520_v47  ;;  %v2317_v47 = vld [vmem:[%s2615_s1 + $0x88] sm:$0xff] }
 0x555   :  { %v502_v6 = vmul.f32 %v1382_v53, %v501_v0  ;;  %v2323_v0 = vld [vmem:[%s2615_s1 + $0x78] sm:$0xff] }
 0x556   :  { %v522_v4 = vmul.f32 %v1384_v46, %v521_v1  ;;  %v2329_v1 = vld [vmem:[%s2615_s1 + $0x80] sm:$0xff] }
 0x557   :  { %v503_v13 = vadd.f32 %v1382_v53, %v502_v6  ;;  %v2359_v6 = vld [vmem:[%s2615_s1 + $0x48] sm:$0xff] }
 0x558   :  { %v523_v7 = vadd.f32 %v1384_v46, %v522_v4  ;;  %v2347_v4 = vld [vmem:[%s2615_s1 + $0x68] sm:$0xff]  ;;  %2707 = vst [vmem:[#allocation5_spill] sm:$0xff] %v2359_v6 }
 0x559   :  { %v507_v19 = vsel %vm506_vm0, %v1382_v53, %v503_v13  ;;  %v2293_v53 = vld [vmem:[%s2615_s1 + $0xb0] sm:$0xff]  ;;  %2705 = vst [vmem:[#allocation3_spill] sm:$0xff] %v2347_v4  ;;  %v2401_v13 = vld [vmem:[%s2615_s1 + $0x20] sm:$0xff] }
 0x55a   :  { %v527_v10 = vsel %vm526_vm12, %v1384_v46, %v523_v7  ;;  %v512_v21 = vsel %vm509_vm1, %v511_v20, %v507_v19  ;;  %v2299_v46 = vld [vmem:[%s2615_s1 + $0xa0] sm:$0xff]  ;;  %v2365_v7 = vld [vmem:[%s2615_s1 + $0x50] sm:$0xff]  ;;  %2714 = vst [vmem:[#allocation12_spill] sm:$0xff] %v2401_v13 }
 0x55b   :  { %v532_v12 = vsel %vm529_vm13, %v531_v8, %v527_v10  ;;  %v537_v22 = vsub.f32 1.0, %v512_v21  ;;  %v539_v25 = vmul.f32 %v512_v21, %v2050_v58  ;;  %v2143_v58 = vld [vmem:[%s2615_s1 + $0x168] sm:$0xff]  ;;  %2708 = vst [vmem:[#allocation6_spill] sm:$0xff] %v2365_v7  ;;  %v2371_v8 = vld [vmem:[%s2615_s1 + $0x40] sm:$0xff]  ;;  %v2383_v10 = vld [vmem:[%s2615_s1 + $0x38] sm:$0xff] }
 0x55c   :  { %v534_v14 = vmul.f32 %v532_v12, %v493_v9  ;;  %2709 = vst [vmem:[#allocation7_spill] sm:$0xff] %v2371_v8  ;;  %v2377_v9 = vld [vmem:[%s2615_s1 + $0x30] sm:$0xff]  ;;  %v2395_v12 = vld [vmem:[%s2615_s1 + $0x18] sm:$0xff] }
 0x55d   :  { %2710 = vst [vmem:[#allocation8_spill] sm:$0xff] %v2377_v9 }
 0x55e   :  { %v535_v18 = vadd.f32 %v1313_v11, %v534_v14  ;;  %2711 = vst [vmem:[#allocation9_spill] sm:$0xff] %v2383_v10  ;;  %v2389_v11 = vld [vmem:[%s2615_s1 + $0x28] sm:$0xff]  ;;  %v2407_v14 = vld [vmem:[%s2615_s1 + $0x10] sm:$0xff] }
 0x55f   :  { %2712 = vst [vmem:[#allocation10_spill] sm:$0xff] %v2389_v11 }
 0x560   :  { %1385 = vtanh.f32 %v535_v18  ;;  %2713 = vst [vmem:[#allocation11_spill] sm:$0xff] %v2395_v12 }
 0x561   :  { %2715 = vst [vmem:[#allocation13_spill] sm:$0xff] %v2407_v14 }
 0x566   :  { %v1386_v23 = vpop.eup %1385 }
 0x567   :  { %v538_v24 = vmul.f32 %v1386_v23, %v537_v22 }
 0x569   :  { %v2125_v26 = vadd.f32 %v539_v25, %v538_v24 }
 0x56b   :  { %1316 = vst [vmem:[%s2619_s4 + $0x10] sm:$0xff] %v2125_v26  ;;  %565 = vmatmul.f32.vlgmr.msra.gmra.mxu1 %v2125_v26  ;;  %585 = vmatmul.f32.vlgmr.msra.gmra.mxu2 %v2125_v26 }
 0x56c   :  { %605 = vmatmul.f32.vlgmr.msra.gmra.mxu3 %v2125_v26  ;;  %891 = vmatpush.msra.mxu1 %v2137_v27 }
 0x56d   :  { %1002 = vmatpush.msra.mxu2 %v2143_v58  ;;  %1022 = vmatpush.msra.mxu3 %v2149_v28 }
 0x56e   :  { %892 = vmatpush.msra.mxu1 %v2155_v29 }
 0x56f   :  { %1003 = vmatpush.msra.mxu2 %v2161_v30  ;;  %1023 = vmatpush.msra.mxu3 %v2167_v31 }
 0x570   :  { %893 = vmatpush.msra.mxu1 %v2173_v32 }
 0x571   :  { %1004 = vmatpush.msra.mxu2 %v2179_v33  ;;  %1024 = vmatpush.msra.mxu3 %v2185_v34 }
 0x572   :  { %894 = vmatpush.msra.mxu1 %v2191_v35 }
 0x573   :  { %1005 = vmatpush.msra.mxu2 %v2197_v36  ;;  %1025 = vmatpush.msra.mxu3 %v2203_v37 }
 0x574   :  { %895 = vmatpush.msra.mxu1 %v2209_v56 }
 0x575   :  { %1006 = vmatpush.msra.mxu2 %v2215_v38  ;;  %1026 = vmatpush.msra.mxu3 %v2221_v52 }
 0x576   :  { %896 = vmatpush.msra.mxu1 %v2227_v60 }
 0x577   :  { %1007 = vmatpush.msra.mxu2 %v2233_v59  ;;  %1027 = vmatpush.msra.mxu3 %v2239_v50 }
 0x578   :  { %897 = vmatpush.msra.mxu1 %v2245_v57 }
 0x579   :  { %1008 = vmatpush.msra.mxu2 %v2251_v45  ;;  %1028 = vmatpush.msra.mxu3 %v2257_v49 }
 0x57a   :  { %898 = vmatpush.msra.mxu1 %v2263_v63 }
 0x57b   :  { %1009 = vmatpush.msra.mxu2 %v2269_v39  ;;  %1029 = vmatpush.msra.mxu3 %v2275_v44 }
 0x57c   :  { %899 = vmatpush.msra.mxu1 %v2281_v62 }
 0x57d   :  { %1010 = vmatpush.msra.mxu2 %v2287_v61  ;;  %1030 = vmatpush.msra.mxu3 %v2293_v53 }
 0x57e   :  { %900 = vmatpush.msra.mxu1 %v2299_v46 }
 0x57f   :  { %1011 = vmatpush.msra.mxu2 %v2305_v54  ;;  %1031 = vmatpush.msra.mxu3 %v2311_v41 }
 0x580   :  { %901 = vmatpush.msra.mxu1 %v2317_v47 }
 0x581   :  { %1012 = vmatpush.msra.mxu2 %v2323_v0  ;;  %1032 = vmatpush.msra.mxu3 %v2329_v1 }
 0x582   :  { %902 = vmatpush.msra.mxu1 %v2335_v2 }
 0x583   :  { %1013 = vmatpush.msra.mxu2 %v2341_v3  ;;  %1033 = vmatpush.msra.mxu3 %v2347_v4 }
 0x584   :  { %903 = vmatpush.msra.mxu1 %v2353_v5 }
 0x585   :  { %1014 = vmatpush.msra.mxu2 %v2359_v6  ;;  %1034 = vmatpush.msra.mxu3 %v2365_v7 }
 0x586   :  { %904 = vmatpush.msra.mxu1 %v2371_v8 }
 0x587   :  { %1015 = vmatpush.msra.mxu2 %v2377_v9  ;;  %1035 = vmatpush.msra.mxu3 %v2383_v10 }
 0x588   :  { %905 = vmatpush.msra.mxu1 %v2389_v11 }
 0x589   :  { %1016 = vmatpush.msra.mxu2 %v2395_v12  ;;  %1036 = vmatpush.msra.mxu3 %v2401_v13 }
 0x58a   :  { %906 = vmatpush.msra.mxu1 %v2407_v14 }
 0x58b   :  { %1017 = vmatpush.msra.mxu2 %v2413_v15  ;;  %1037 = vmatpush.msra.mxu3 %v2419_v17 }
 0x5e8   :  { %v566_v18 = vpop.f32.mrf.mxu1 }
 0x5ee   :  { %v586_v19 = vpop.f32.mrf.mxu2 }
 0x5ef   :  { %v609_v20 = vadd.f32 %v586_v19, %v566_v18  ;;  %v606_v21 = vpop.f32.mrf.mxu3 }
 0x5f1   :  { %v610_v22 = vadd.f32 %v609_v20, %v606_v21 }
 0x5f3   :  { %611 = vadd.xlane.f32.xlu0 %v610_v22 }
 0x666   :  { %v612_v23 = vpop.xlane.xlu0 %611 }
 0x667   :  { %v613_v24 = vmul.f32 %v612_v23, %v2701_v16 }
 0x669   :  { %v614_v25 = vsub.f32 %v566_v18, %v613_v24  ;;  %v615_v14 = vsub.f32 %v586_v19, %v613_v24  ;;  %v616_v13 = vsub.f32 %v606_v21, %v613_v24 }
 0x66b   :  { %v617_v15 = vmul.f32 %v614_v25, %v614_v25  ;;  %v618_v12 = vmul.f32 %v615_v14, %v615_v14  ;;  %v619_v11 = vmul.f32 %v616_v13, %v616_v13 }
 0x66d   :  { %v620_v10 = vadd.f32 %v618_v12, %v617_v15 }
 0x66f   :  { %v621_v9 = vadd.f32 %v620_v10, %v619_v11  ;;  %v1318_v11 = vld [vmem:[%s2618_s0 + $0x50] sm:$0xff] }
 0x671   :  { %622 = vadd.xlane.f32.xlu1 %v621_v9 }
 0x6e4   :  { %v623_v8 = vpop.xlane.xlu1 %622 }
 0x6e5   :  { %v624_v17 = vmul.f32 %v623_v8, %v2701_v16  ;;  %v1317_v8 = vld [vmem:[%s2618_s0 + $0x48] sm:$0xff] }
 0x6e7   :  { %v625_v7 = vadd.f32 1e-05, %v624_v17 }
 0x6e9   :  { %1387 = vrsqrt.f32 %v625_v7  ;;  %vm632_vm3 = vweird.f32 %v625_v7 }
 0x6ef   :  { %v1388_v6 = vpop.eup %1387 }
 0x6f0   :  { %v627_v20 = vmul.f32 %v1388_v6, %v625_v7  ;;  %vm633_vm2 = vweird.f32 %v1388_v6 }
 0x6f1   :  { %vm634_vm4 = vmor %vm632_vm3, %vm633_vm2 }
 0x6f2   :  { %v628_v22 = vmul.f32 %v1388_v6, %v627_v20 }
 0x6f4   :  { %v629_v5 = vmul.f32 0.5, %v628_v22 }
 0x6f6   :  { %v630_v4 = vsub.f32 1.5, %v629_v5 }
 0x6f8   :  { %v631_v18 = vmul.f32 %v1388_v6, %v630_v4 }
 0x6fa   :  { %v635_v19 = vsel %vm634_vm4, %v1388_v6, %v631_v18 }
 0x6fb   :  { %v636_v21 = vmul.f32 %v635_v19, %v614_v25  ;;  %v637_v23 = vmul.f32 %v635_v19, %v615_v14 }
 0x6fd   :  { %v639_v10 = vmul.f32 %v636_v21, %v2702_v48  ;;  %v640_v9 = vmul.f32 %v637_v23, %v2703_v43  ;;  %v638_v21 = vmul.f32 %v635_v19, %v616_v13  ;;  %v1319_v13 = vld [vmem:[%s2618_s0 + $0x58] sm:$0xff] }
 0x6ff   :  { %v642_v5 = vadd.f32 %v639_v10, %v2704_v42  ;;  %v643_v4 = vadd.f32 %v640_v9, %v1954_v51 }
 0x701   :  { %v645_v7 = vadd.f32 %v1317_v8, %v642_v5  ;;  %v665_v6 = vadd.f32 %v1318_v11, %v643_v4  ;;  %v641_v8 = vmul.f32 %v638_v21, %v1966_v40 }
 0x703   :  { %v1320_v12 = vmul.f32 -1.442695, %v645_v7  ;;  %v1321_v14 = vmul.f32 -1.442695, %v665_v6 }
 0x705   :  { %1389 = vpow2.f32 %v1320_v12  ;;  %v644_v12 = vadd.f32 %v641_v8, %v1968_v55 }
 0x706   :  { %1391 = vpow2.f32 %v1321_v14 }
 0x70b   :  { %v1390_v15 = vpop.eup %1389 }
 0x70c   :  { %v1392_v17 = vpop.eup %1391  ;;  %v649_v24 = vadd.f32 1.0, %v1390_v15 }
 0x70d   :  { %v669_v25 = vadd.f32 1.0, %v1392_v17 }
 0x70e   :  { %1393 = vrcp.f32 %v649_v24  ;;  %vm655_vm10 = vweird.f32 %v649_v24 }
 0x70f   :  { %1395 = vrcp.f32 %v669_v25  ;;  %v681_v9 = vand.u32 2147483648, %v669_v25  ;;  %v679_v5 = vand.u32 2147483647, %v669_v25  ;;  %vm675_vm6 = vweird.f32 %v669_v25 }
 0x711   :  { %v682_v6 = vor.u32 1.1754944e-38, %v681_v9  ;;  %vm680_vm8 = vcmp.eq.f32.partialorder %v679_v5, 8.507059e+37 }
 0x714   :  { %v1394_v20 = vpop.eup %1393 }
 0x715   :  { %v1396_v22 = vpop.eup %1395  ;;  %v651_v18 = vmul.f32 %v1394_v20, %v649_v24  ;;  %vm656_vm9 = vweird.f32 %v1394_v20 }
 0x716   :  { %v671_v23 = vmul.f32 %v1396_v22, %v669_v25  ;;  %vm676_vm5 = vweird.f32 %v1396_v22  ;;  %vm657_vm11 = vmor %vm655_vm10, %vm656_vm9 }
 0x717   :  { %v652_v10 = vsub.f32 1.0, %v651_v18  ;;  %vm677_vm7 = vmor %vm675_vm6, %vm676_vm5  ;;  %v659_v18 = vand.u32 2147483647, %v649_v24 }
 0x718   :  { %v672_v42 = vsub.f32 1.0, %v671_v23 }
 0x719   :  { %v653_v4 = vmul.f32 %v1394_v20, %v652_v10  ;;  %vm660_vm12 = vcmp.eq.f32.partialorder %v659_v18, 8.507059e+37 }
 0x71a   :  { %v673_v11 = vmul.f32 %v1396_v22, %v672_v42  ;;  %v661_v42 = vand.u32 2147483648, %v649_v24 }
 0x71b   :  { %v654_v15 = vadd.f32 %v1394_v20, %v653_v4 }
 0x71c   :  { %v674_v7 = vadd.f32 %v1396_v22, %v673_v11  ;;  %v662_v23 = vor.u32 1.1754944e-38, %v661_v42 }
 0x71d   :  { %v658_v25 = vsel %vm657_vm11, %v1394_v20, %v654_v15 }
 0x71e   :  { %v678_v14 = vsel %vm677_vm7, %v1396_v22, %v674_v7  ;;  %v663_v10 = vsel %vm660_vm12, %v662_v23, %v658_v25 }
 0x71f   :  { %v683_v19 = vsel %vm680_vm8, %v682_v6, %v678_v14  ;;  %v688_v22 = vsub.f32 1.0, %v663_v10  ;;  %v690_v11 = vmul.f32 %v663_v10, %v2125_v26  ;;  %v2718_v26 = vld [vmem:[#allocation3_spill] sm:$0xff] }
 0x720   :  { %v685_v17 = vmul.f32 %v683_v19, %v644_v12 }
 0x722   :  { %v686_v21 = vadd.f32 %v1319_v13, %v685_v17 }
 0x724   :  { %1397 = vtanh.f32 %v686_v21 }
 0x72a   :  { %v1398_v9 = vpop.eup %1397 }
 0x72b   :  { %v689_v8 = vmul.f32 %v1398_v9, %v688_v22  ;;  %v1323_v9 = vld [vmem:[%s2618_s0 + $0x60] sm:$0xff] }
 0x72d   :  { %v2440_v5 = vadd.f32 %v690_v11, %v689_v8  ;;  %v1324_v8 = vld [vmem:[%s2618_s0 + $0x68] sm:$0xff] }
 0x72e   :  { %v2731_v11 = vld [vmem:[#allocation16_spill] sm:$0xff] }
 0x72f   :  { %1322 = vst [vmem:[%s2619_s4 + $0x18] sm:$0xff] %v2440_v5  ;;  %716 = vmatmul.f32.vlgmr.msrb.gmra.mxu0 %v2440_v5  ;;  %736 = vmatmul.f32.vlgmr.msrb.gmra.mxu1 %v2440_v5 }
 0x730   :  { %756 = vmatmul.f32.vlgmr.msrb.gmra.mxu2 %v2440_v5  ;;  %1042 = vmatpush.msrb.mxu0 %v2137_v27 }
 0x731   :  { %1153 = vmatpush.msrb.mxu1 %v2143_v58  ;;  %1173 = vmatpush.msrb.mxu2 %v2149_v28  ;;  %v2719_v58 = vld [vmem:[#allocation4_spill] sm:$0xff]  ;;  %v2720_v28 = vld [vmem:[#allocation5_spill] sm:$0xff] }
 0x732   :  { %1043 = vmatpush.msrb.mxu0 %v2155_v29 }
 0x733   :  { %1154 = vmatpush.msrb.mxu1 %v2161_v30  ;;  %1174 = vmatpush.msrb.mxu2 %v2167_v31  ;;  %v2721_v30 = vld [vmem:[#allocation6_spill] sm:$0xff]  ;;  %v2722_v31 = vld [vmem:[#allocation7_spill] sm:$0xff] }
 0x734   :  { %1044 = vmatpush.msrb.mxu0 %v2173_v32 }
 0x735   :  { %1155 = vmatpush.msrb.mxu1 %v2179_v33  ;;  %1175 = vmatpush.msrb.mxu2 %v2185_v34  ;;  %v2723_v33 = vld [vmem:[#allocation8_spill] sm:$0xff]  ;;  %v2724_v34 = vld [vmem:[#allocation9_spill] sm:$0xff] }
 0x736   :  { %1045 = vmatpush.msrb.mxu0 %v2191_v35 }
 0x737   :  { %1156 = vmatpush.msrb.mxu1 %v2197_v36  ;;  %1176 = vmatpush.msrb.mxu2 %v2203_v37  ;;  %v2725_v36 = vld [vmem:[#allocation10_spill] sm:$0xff]  ;;  %v2726_v37 = vld [vmem:[#allocation11_spill] sm:$0xff] }
 0x738   :  { %1046 = vmatpush.msrb.mxu0 %v2209_v56 }
 0x739   :  { %1157 = vmatpush.msrb.mxu1 %v2215_v38  ;;  %1177 = vmatpush.msrb.mxu2 %v2221_v52  ;;  %v2727_v38 = vld [vmem:[#allocation12_spill] sm:$0xff]  ;;  %v2728_v52 = vld [vmem:[#allocation13_spill] sm:$0xff] }
 0x73a   :  { %1047 = vmatpush.msrb.mxu0 %v2227_v60 }
 0x73b   :  { %1158 = vmatpush.msrb.mxu1 %v2233_v59  ;;  %1178 = vmatpush.msrb.mxu2 %v2239_v50  ;;  %v2729_v59 = vld [vmem:[#allocation14_spill] sm:$0xff]  ;;  %v2730_v50 = vld [vmem:[#allocation15_spill] sm:$0xff] }
 0x73c   :  { %1048 = vmatpush.msrb.mxu0 %v2245_v57 }
 0x73d   :  { %1159 = vmatpush.msrb.mxu1 %v2251_v45  ;;  %1179 = vmatpush.msrb.mxu2 %v2257_v49 }
 0x73e   :  { %1049 = vmatpush.msrb.mxu0 %v2263_v63 }
 0x73f   :  { %1160 = vmatpush.msrb.mxu1 %v2269_v39  ;;  %1180 = vmatpush.msrb.mxu2 %v2275_v44 }
 0x740   :  { %1050 = vmatpush.msrb.mxu0 %v2281_v62 }
 0x741   :  { %1161 = vmatpush.msrb.mxu1 %v2287_v61  ;;  %1181 = vmatpush.msrb.mxu2 %v2293_v53 }
 0x742   :  { %1051 = vmatpush.msrb.mxu0 %v2299_v46 }
 0x743   :  { %1162 = vmatpush.msrb.mxu1 %v2305_v54  ;;  %1182 = vmatpush.msrb.mxu2 %v2311_v41 }
 0x744   :  { %1052 = vmatpush.msrb.mxu0 %v2317_v47 }
 0x745   :  { %1163 = vmatpush.msrb.mxu1 %v2323_v0  ;;  %1183 = vmatpush.msrb.mxu2 %v2329_v1 }
 0x746   :  { %1053 = vmatpush.msrb.mxu0 %v2335_v2 }
 0x747   :  { %1164 = vmatpush.msrb.mxu1 %v2341_v3  ;;  %1184 = vmatpush.msrb.mxu2 %v2718_v26 }
 0x748   :  { %1054 = vmatpush.msrb.mxu0 %v2719_v58 }
 0x749   :  { %1165 = vmatpush.msrb.mxu1 %v2720_v28  ;;  %1185 = vmatpush.msrb.mxu2 %v2721_v30 }
 0x74a   :  { %1055 = vmatpush.msrb.mxu0 %v2722_v31 }
 0x74b   :  { %1166 = vmatpush.msrb.mxu1 %v2723_v33  ;;  %1186 = vmatpush.msrb.mxu2 %v2724_v34 }
 0x74c   :  { %1056 = vmatpush.msrb.mxu0 %v2725_v36 }
 0x74d   :  { %1167 = vmatpush.msrb.mxu1 %v2726_v37  ;;  %1187 = vmatpush.msrb.mxu2 %v2727_v38 }
 0x74e   :  { %1057 = vmatpush.msrb.mxu0 %v2728_v52 }
 0x74f   :  { %1168 = vmatpush.msrb.mxu1 %v2729_v59  ;;  %1188 = vmatpush.msrb.mxu2 %v2730_v50 }
 0x7ac   :  { %v717_v45 = vpop.f32.mrf.mxu0  ;;  %v737_v49 = vpop.f32.mrf.mxu1 }
 0x7ad   :  { %v760_v39 = vadd.f32 %v737_v49, %v717_v45 }
 0x7b3   :  { %v757_v44 = vpop.f32.mrf.mxu2 }
 0x7b4   :  { %v761_v61 = vadd.f32 %v760_v39, %v757_v44 }
 0x7b6   :  { %762 = vadd.xlane.f32.xlu2 %v761_v61 }
 0x829   :  { %v763_v53 = vpop.xlane.xlu2 %762 }
 0x82a   :  { %v764_v54 = vmul.f32 %v763_v53, %v2701_v16 }
 0x82c   :  { %v765_v41 = vsub.f32 %v717_v45, %v764_v54  ;;  %v766_v0 = vsub.f32 %v737_v49, %v764_v54  ;;  %v767_v1 = vsub.f32 %v757_v44, %v764_v54 }
 0x82e   :  { %v768_v3 = vmul.f32 %v765_v41, %v765_v41  ;;  %v769_v24 = vmul.f32 %v766_v0, %v766_v0  ;;  %v770_v20 = vmul.f32 %v767_v1, %v767_v1 }
 0x830   :  { %v771_v4 = vadd.f32 %v769_v24, %v768_v3 }
 0x832   :  { %v772_v7 = vadd.f32 %v771_v4, %v770_v20 }
 0x834   :  { %773 = vadd.xlane.f32.xlu0 %v772_v7 }
 0x8a7   :  { %v774_v6 = vpop.xlane.xlu0 %773 }
 0x8a8   :  { %v775_v12 = vmul.f32 %v774_v6, %v2701_v16 }
 0x8aa   :  { %v776_v14 = vadd.f32 1e-05, %v775_v12 }
 0x8ac   :  { %1399 = vrsqrt.f32 %v776_v14  ;;  %vm783_vm14 = vweird.f32 %v776_v14 }
 0x8b2   :  { %v1400_v13 = vpop.eup %1399 }
 0x8b3   :  { %v778_v19 = vmul.f32 %v1400_v13, %v776_v14  ;;  %vm784_vm13 = vweird.f32 %v1400_v13 }
 0x8b4   :  { %vm785_vm15 = vmor %vm783_vm14, %vm784_vm13 }
 0x8b5   :  { %v779_v15 = vmul.f32 %v1400_v13, %v778_v19 }
 0x8b7   :  { %v780_v17 = vmul.f32 0.5, %v779_v15 }
 0x8b9   :  { %v781_v42 = vsub.f32 1.5, %v780_v17 }
 0x8bb   :  { %v782_v18 = vmul.f32 %v1400_v13, %v781_v42 }
 0x8bd   :  { %v786_v21 = vsel %vm785_vm15, %v1400_v13, %v782_v18 }
 0x8be   :  { %v787_v25 = vmul.f32 %v786_v21, %v765_v41  ;;  %v788_v23 = vmul.f32 %v786_v21, %v766_v0  ;;  %v789_v61 = vmul.f32 %v786_v21, %v767_v1  ;;  %v1325_v1 = vld [vmem:[%s2618_s0 + $0x70] sm:$0xff] }
 0x8c0   :  { %v790_v10 = vmul.f32 %v787_v25, %v2702_v48  ;;  %v791_v22 = vmul.f32 %v788_v23, %v2703_v43  ;;  %v792_v3 = vmul.f32 %v789_v61, %v1966_v40  ;;  %v1329_v61 = vld [vmem:[%s2618_s0 + $0x78] sm:$0xff] }
 0x8c2   :  { %v793_v26 = vadd.f32 %v790_v10, %v2731_v11  ;;  %v794_v28 = vadd.f32 %v791_v22, %v1954_v51  ;;  %v795_v12 = vadd.f32 %v792_v3, %v1968_v55 }
 0x8c4   :  { %v796_v30 = vadd.f32 %v1323_v9, %v793_v26  ;;  %v816_v33 = vadd.f32 %v1324_v8, %v794_v28 }
 0x8c6   :  { %v1326_v34 = vmul.f32 -1.442695, %v796_v30  ;;  %v1327_v37 = vmul.f32 -1.442695, %v816_v33 }
 0x8c8   :  { %1401 = vpow2.f32 %v1326_v34 }
 0x8c9   :  { %1403 = vpow2.f32 %v1327_v37 }
 0x8ce   :  { %v1402_v38 = vpop.eup %1401 }
 0x8cf   :  { %v1404_v59 = vpop.eup %1403  ;;  %v800_v50 = vadd.f32 1.0, %v1402_v38 }
 0x8d0   :  { %v820_v45 = vadd.f32 1.0, %v1404_v59 }
 0x8d1   :  { %1405 = vrcp.f32 %v800_v50  ;;  %v812_v17 = vand.u32 2147483648, %v800_v50  ;;  %vm806_vm5 = vweird.f32 %v800_v50  ;;  %v810_v42 = vand.u32 2147483647, %v800_v50 }
 0x8d2   :  { %1407 = vrcp.f32 %v820_v45  ;;  %v832_v0 = vand.u32 2147483648, %v820_v45  ;;  %v830_v20 = vand.u32 2147483647, %v820_v45  ;;  %vm826_vm1 = vweird.f32 %v820_v45 }
 0x8d3   :  { %v813_v25 = vor.u32 1.1754944e-38, %v812_v17  ;;  %vm811_vm7 = vcmp.eq.f32.partialorder %v810_v42, 8.507059e+37 }
 0x8d4   :  { %v833_v6 = vor.u32 1.1754944e-38, %v832_v0  ;;  %vm831_vm3 = vcmp.eq.f32.partialorder %v830_v20, 8.507059e+37 }
 0x8d7   :  { %v1406_v49 = vpop.eup %1405 }
 0x8d8   :  { %v1408_v39 = vpop.eup %1407  ;;  %v802_v44 = vmul.f32 %v1406_v49, %v800_v50  ;;  %vm807_vm4 = vweird.f32 %v1406_v49 }
 0x8d9   :  { %v822_v53 = vmul.f32 %v1408_v39, %v820_v45  ;;  %vm827_vm0 = vweird.f32 %v1408_v39  ;;  %vm808_vm6 = vmor %vm806_vm5, %vm807_vm4 }
 0x8da   :  { %v803_v54 = vsub.f32 1.0, %v802_v44  ;;  %vm828_vm2 = vmor %vm826_vm1, %vm827_vm0 }
 0x8db   :  { %v823_v41 = vsub.f32 1.0, %v822_v53  ;;  %v1330_v53 = vld [vmem:[%s2618_s0 + $0x80] sm:$0xff] }
 0x8dc   :  { %v804_v4 = vmul.f32 %v1406_v49, %v803_v54 }
 0x8dd   :  { %v824_v24 = vmul.f32 %v1408_v39, %v823_v41 }
 0x8de   :  { %v805_v19 = vadd.f32 %v1406_v49, %v804_v4 }
 0x8df   :  { %v825_v7 = vadd.f32 %v1408_v39, %v824_v24 }
 0x8e0   :  { %v809_v21 = vsel %vm808_vm6, %v1406_v49, %v805_v19 }
 0x8e1   :  { %v829_v14 = vsel %vm828_vm2, %v1408_v39, %v825_v7  ;;  %v814_v23 = vsel %vm811_vm7, %v813_v25, %v809_v21 }
 0x8e2   :  { %v834_v13 = vsel %vm831_vm3, %v833_v6, %v829_v14  ;;  %v839_v10 = vsub.f32 1.0, %v814_v23  ;;  %v841_v8 = vmul.f32 %v814_v23, %v2440_v5 }
 0x8e3   :  { %v836_v15 = vmul.f32 %v834_v13, %v795_v12 }
 0x8e5   :  { %v837_v18 = vadd.f32 %v1325_v1, %v836_v15 }
 0x8e7   :  { %1409 = vtanh.f32 %v837_v18 }
 0x8ed   :  { %v1410_v22 = vpop.eup %1409 }
 0x8ee   :  { %v840_v9 = vmul.f32 %v1410_v22, %v839_v10 }
 0x8f0   :  { %v2515_v26 = vadd.f32 %v841_v8, %v840_v9 }
 0x8f2   :  { %1328 = vst [vmem:[%s2619_s4 + $0x20] sm:$0xff] %v2515_v26  ;;  %867 = vmatmul.f32.vlgmr.msrb.gmra.mxu3 %v2515_v26  ;;  %887 = vmatmul.f32.vlgmr.msra.gmra.mxu0 %v2515_v26 }
 0x8f3   :  { %907 = vmatmul.f32.vlgmr.msra.gmra.mxu1 %v2515_v26  ;;  %1193 = vmatpush.msrb.mxu3 %v2137_v27 }
 0x8f5   :  { %1194 = vmatpush.msrb.mxu3 %v2155_v29 }
 0x8f7   :  { %1195 = vmatpush.msrb.mxu3 %v2173_v32 }
 0x8f9   :  { %1196 = vmatpush.msrb.mxu3 %v2191_v35 }
 0x8fb   :  { %1197 = vmatpush.msrb.mxu3 %v2209_v56 }
 0x8fd   :  { %1198 = vmatpush.msrb.mxu3 %v2227_v60 }
 0x8ff   :  { %1199 = vmatpush.msrb.mxu3 %v2245_v57 }
 0x901   :  { %1200 = vmatpush.msrb.mxu3 %v2263_v63 }
 0x903   :  { %1201 = vmatpush.msrb.mxu3 %v2281_v62 }
 0x905   :  { %1202 = vmatpush.msrb.mxu3 %v2299_v46 }
 0x907   :  { %1203 = vmatpush.msrb.mxu3 %v2317_v47 }
 0x909   :  { %1204 = vmatpush.msrb.mxu3 %v2335_v2 }
 0x90b   :  { %1205 = vmatpush.msrb.mxu3 %v2719_v58 }
 0x90d   :  { %1206 = vmatpush.msrb.mxu3 %v2722_v31 }
 0x90f   :  { %1207 = vmatpush.msrb.mxu3 %v2725_v36 }
 0x911   :  { %1208 = vmatpush.msrb.mxu3 %v2728_v52 }
 0x96f   :  { %v888_v27 = vpop.f32.mrf.mxu0 }
 0x970   :  { %v908_v35 = vpop.f32.mrf.mxu1 }
 0x975   :  { %v868_v29 = vpop.f32.mrf.mxu3 }
 0x976   :  { %v911_v32 = vadd.f32 %v888_v27, %v868_v29 }
 0x978   :  { %v912_v56 = vadd.f32 %v911_v32, %v908_v35 }
 0x97a   :  { %913 = vadd.xlane.f32.xlu1 %v912_v56 }
 0x9ed   :  { %v914_v60 = vpop.xlane.xlu1 %913 }
 0x9ee   :  { %v915_v57 = vmul.f32 %v914_v60, %v2701_v16 }
 0x9f0   :  { %v916_v63 = vsub.f32 %v868_v29, %v915_v57  ;;  %v917_v62 = vsub.f32 %v888_v27, %v915_v57  ;;  %v918_v46 = vsub.f32 %v908_v35, %v915_v57  ;;  %v1331_v29 = vld [vmem:[%s2618_s0 + $0x88] sm:$0xff] }
 0x9f2   :  { %v919_v47 = vmul.f32 %v916_v63, %v916_v63  ;;  %v920_v2 = vmul.f32 %v917_v62, %v917_v62  ;;  %v921_v5 = vmul.f32 %v918_v46, %v918_v46 }
 0x9f4   :  { %v922_v58 = vadd.f32 %v920_v2, %v919_v47 }
 0x9f6   :  { %v923_v31 = vadd.f32 %v922_v58, %v921_v5 }
 0x9f8   :  { %924 = vadd.xlane.f32.xlu2 %v923_v31 }
 0xa6b   :  { %v925_v36 = vpop.xlane.xlu2 %924 }
 0xa6c   :  { %v926_v52 = vmul.f32 %v925_v36, %v2701_v16 }
 0xa6e   :  { %v927_v28 = vadd.f32 1e-05, %v926_v52 }
 0xa70   :  { %1411 = vrsqrt.f32 %v927_v28  ;;  %vm934_vm9 = vweird.f32 %v927_v28 }
 0xa76   :  { %v1412_v30 = vpop.eup %1411 }
 0xa77   :  { %v929_v33 = vmul.f32 %v1412_v30, %v927_v28  ;;  %vm935_vm8 = vweird.f32 %v1412_v30 }
 0xa78   :  { %vm936_vm10 = vmor %vm934_vm9, %vm935_vm8 }
 0xa79   :  { %v930_v34 = vmul.f32 %v1412_v30, %v929_v33 }
 0xa7b   :  { %v931_v37 = vmul.f32 0.5, %v930_v34 }
 0xa7d   :  { %v932_v38 = vsub.f32 1.5, %v931_v37 }
 0xa7f   :  { %v933_v59 = vmul.f32 %v1412_v30, %v932_v38 }
 0xa81   :  { %v937_v50 = vsel %vm936_vm10, %v1412_v30, %v933_v59 }
 0xa82   :  { %v938_v45 = vmul.f32 %v937_v50, %v916_v63  ;;  %v939_v49 = vmul.f32 %v937_v50, %v917_v62  ;;  %v940_v19 = vmul.f32 %v937_v50, %v918_v46 }
 0xa84   :  { %v941_v39 = vmul.f32 %v938_v45, %v2702_v48  ;;  %v942_v44 = vmul.f32 %v939_v49, %v2703_v43  ;;  %v943_v21 = vmul.f32 %v940_v19, %v1966_v40  ;;  %v1335_v19 = vld [vmem:[%s2618_s0 + $0x90] sm:$0xff] }
 0xa86   :  { %v944_v54 = vadd.f32 %v941_v39, %v2731_v11  ;;  %v945_v41 = vadd.f32 %v942_v44, %v1954_v51  ;;  %v946_v8 = vadd.f32 %v943_v21, %v1968_v55 }
 0xa88   :  { %v947_v0 = vadd.f32 %v1329_v61, %v944_v54  ;;  %v967_v3 = vadd.f32 %v1330_v53, %v945_v41 }
 0xa8a   :  { %v1332_v24 = vmul.f32 -1.442695, %v947_v0  ;;  %v1333_v20 = vmul.f32 -1.442695, %v967_v3 }
 0xa8c   :  { %1413 = vpow2.f32 %v1332_v24 }
 0xa8d   :  { %1415 = vpow2.f32 %v1333_v20 }
 0xa92   :  { %v1414_v4 = vpop.eup %1413 }
 0xa93   :  { %v1416_v7 = vpop.eup %1415  ;;  %v951_v6 = vadd.f32 1.0, %v1414_v4 }
 0xa94   :  { %v971_v12 = vadd.f32 1.0, %v1416_v7 }
 0xa95   :  { %1417 = vrcp.f32 %v951_v6  ;;  %v963_v60 = vand.u32 2147483648, %v951_v6  ;;  %vm957_vm0 = vweird.f32 %v951_v6  ;;  %v961_v57 = vand.u32 2147483647, %v951_v6 }
 0xa96   :  { %1419 = vrcp.f32 %v971_v12  ;;  %v983_v18 = vand.u32 2147483648, %v971_v12  ;;  %v981_v23 = vand.u32 2147483647, %v971_v12  ;;  %vm977_vm12 = vweird.f32 %v971_v12 }
 0xa97   :  { %v964_v46 = vor.u32 1.1754944e-38, %v963_v60  ;;  %vm962_vm2 = vcmp.eq.f32.partialorder %v961_v57, 8.507059e+37 }
 0xa98   :  { %v984_v9 = vor.u32 1.1754944e-38, %v983_v18  ;;  %vm982_vm14 = vcmp.eq.f32.partialorder %v981_v23, 8.507059e+37 }
 0xa9b   :  { %v1418_v14 = vpop.eup %1417 }
 0xa9c   :  { %v1420_v1 = vpop.eup %1419  ;;  %v953_v13 = vmul.f32 %v1418_v14, %v951_v6  ;;  %vm958_vm15 = vweird.f32 %v1418_v14 }
 0xa9d   :  { %v973_v15 = vmul.f32 %v1420_v1, %v971_v12  ;;  %vm978_vm11 = vweird.f32 %v1420_v1  ;;  %vm959_vm1 = vmor %vm957_vm0, %vm958_vm15 }
 0xa9e   :  { %v954_v17 = vsub.f32 1.0, %v953_v13  ;;  %vm979_vm13 = vmor %vm977_vm12, %vm978_vm11 }
 0xa9f   :  { %v974_v42 = vsub.f32 1.0, %v973_v15  ;;  %v1336_v15 = vld [vmem:[%s2618_s0 + $0x98] sm:$0xff] }
 0xaa0   :  { %v955_v10 = vmul.f32 %v1418_v14, %v954_v17 }
 0xaa1   :  { %v975_v25 = vmul.f32 %v1420_v1, %v974_v42 }
 0xaa2   :  { %v956_v35 = vadd.f32 %v1418_v14, %v955_v10 }
 0xaa3   :  { %v976_v22 = vadd.f32 %v1420_v1, %v975_v25 }
 0xaa4   :  { %v960_v62 = vsel %vm959_vm1, %v1418_v14, %v956_v35 }
 0xaa5   :  { %v980_v27 = vsel %vm979_vm13, %v1420_v1, %v976_v22  ;;  %v965_v47 = vsel %vm962_vm2, %v964_v46, %v960_v62 }
 0xaa6   :  { %v985_v32 = vsel %vm982_vm14, %v984_v9, %v980_v27  ;;  %v990_v2 = vsub.f32 1.0, %v965_v47  ;;  %v992_v31 = vmul.f32 %v965_v47, %v2515_v26 }
 0xaa7   :  { %v987_v56 = vmul.f32 %v985_v32, %v946_v8 }
 0xaa9   :  { %v988_v63 = vadd.f32 %v1331_v29, %v987_v56 }
 0xaab   :  { %1421 = vtanh.f32 %v988_v63 }
 0xab1   :  { %v1422_v5 = vpop.eup %1421 }
 0xab2   :  { %v991_v58 = vmul.f32 %v1422_v5, %v990_v2 }
 0xab4   :  { %v2558_v36 = vadd.f32 %v992_v31, %v991_v58 }
 0xab6   :  { %1334 = vst [vmem:[%s2619_s4 + $0x28] sm:$0xff] %v2558_v36  ;;  %1018 = vmatmul.f32.vlgmr.msra.gmra.mxu2 %v2558_v36  ;;  %1038 = vmatmul.f32.vlgmr.msra.gmra.mxu3 %v2558_v36 }
 0xab7   :  { %1058 = vmatmul.f32.vlgmr.msrb.gmra.mxu0 %v2558_v36 }
 0xb34   :  { %v1059_v33 = vpop.f32.mrf.mxu0 }
 0xb39   :  { %v1019_v52 = vpop.f32.mrf.mxu2  ;;  %v1039_v28 = vpop.f32.mrf.mxu3 }
 0xb3a   :  { %v1062_v30 = vadd.f32 %v1039_v28, %v1019_v52 }
 0xb3c   :  { %v1063_v34 = vadd.f32 %v1062_v30, %v1059_v33 }
 0xb3e   :  { %1064 = vadd.xlane.f32.xlu0 %v1063_v34 }
 0xbb1   :  { %v1065_v26 = vpop.xlane.xlu0 %1064 }
 0xbb2   :  { %v1066_v37 = vmul.f32 %v1065_v26, %v2701_v16 }
 0xbb4   :  { %v1067_v38 = vsub.f32 %v1019_v52, %v1066_v37  ;;  %v1068_v59 = vsub.f32 %v1039_v28, %v1066_v37  ;;  %v1069_v50 = vsub.f32 %v1059_v33, %v1066_v37  ;;  %v1337_v28 = vld [vmem:[%s2618_s0 + $0xa0] sm:$0xff] }
 0xbb6   :  { %v1070_v45 = vmul.f32 %v1067_v38, %v1067_v38  ;;  %v1071_v49 = vmul.f32 %v1068_v59, %v1068_v59  ;;  %v1072_v39 = vmul.f32 %v1069_v50, %v1069_v50 }
 0xbb8   :  { %v1073_v44 = vadd.f32 %v1071_v49, %v1070_v45 }
 0xbba   :  { %v1074_v61 = vadd.f32 %v1073_v44, %v1072_v39 }
 0xbbc   :  { %1075 = vadd.xlane.f32.xlu1 %v1074_v61 }
 0xc2f   :  { %v1076_v53 = vpop.xlane.xlu1 %1075 }
 0xc30   :  { %v1077_v54 = vmul.f32 %v1076_v53, %v2701_v16 }
 0xc32   :  { %v1078_v41 = vadd.f32 1e-05, %v1077_v54 }
 0xc34   :  { %1423 = vrsqrt.f32 %v1078_v41  ;;  %vm1085_vm4 = vweird.f32 %v1078_v41 }
 0xc3a   :  { %v1424_v0 = vpop.eup %1423 }
 0xc3b   :  { %v1080_v3 = vmul.f32 %v1424_v0, %v1078_v41  ;;  %vm1086_vm3 = vweird.f32 %v1424_v0 }
 0xc3c   :  { %vm1087_vm5 = vmor %vm1085_vm4, %vm1086_vm3 }
 0xc3d   :  { %v1081_v24 = vmul.f32 %v1424_v0, %v1080_v3 }
 0xc3f   :  { %v1082_v20 = vmul.f32 0.5, %v1081_v24 }
 0xc41   :  { %v1083_v4 = vsub.f32 1.5, %v1082_v20 }
 0xc43   :  { %v1084_v7 = vmul.f32 %v1424_v0, %v1083_v4 }
 0xc45   :  { %v1088_v6 = vsel %vm1087_vm5, %v1424_v0, %v1084_v7 }
 0xc46   :  { %v1089_v12 = vmul.f32 %v1088_v6, %v1067_v38  ;;  %v1090_v14 = vmul.f32 %v1088_v6, %v1068_v59  ;;  %v1091_v35 = vmul.f32 %v1088_v6, %v1069_v50 }
 0xc48   :  { %v1092_v1 = vmul.f32 %v1089_v12, %v2702_v48  ;;  %v1093_v13 = vmul.f32 %v1090_v14, %v2703_v43  ;;  %v1094_v62 = vmul.f32 %v1091_v35, %v1966_v40  ;;  %v1342_v35 = vld [vmem:[%s2618_s0 + $0xb0] sm:$0xff] }
 0xc4a   :  { %v1095_v17 = vadd.f32 %v1092_v1, %v2731_v11  ;;  %v1096_v42 = vadd.f32 %v1093_v13, %v1954_v51  ;;  %v1097_v31 = vadd.f32 %v1094_v62, %v1968_v55 }
 0xc4c   :  { %v1098_v18 = vadd.f32 %v1335_v19, %v1095_v17  ;;  %v1118_v21 = vadd.f32 %v1336_v15, %v1096_v42 }
 0xc4e   :  { %v1338_v25 = vmul.f32 -1.442695, %v1098_v18  ;;  %v1339_v23 = vmul.f32 -1.442695, %v1118_v21 }
 0xc50   :  { %1425 = vpow2.f32 %v1338_v25 }
 0xc51   :  { %1427 = vpow2.f32 %v1339_v23 }
 0xc56   :  { %v1426_v10 = vpop.eup %1425 }
 0xc57   :  { %v1428_v22 = vpop.eup %1427  ;;  %v1102_v9 = vadd.f32 1.0, %v1426_v10 }
 0xc58   :  { %v1122_v8 = vadd.f32 1.0, %v1428_v22 }
 0xc59   :  { %1429 = vrcp.f32 %v1102_v9  ;;  %v1114_v26 = vand.u32 2147483648, %v1102_v9  ;;  %vm1108_vm11 = vweird.f32 %v1102_v9  ;;  %v1112_v37 = vand.u32 2147483647, %v1102_v9 }
 0xc5a   :  { %1431 = vrcp.f32 %v1122_v8  ;;  %v1134_v63 = vand.u32 2147483648, %v1122_v8  ;;  %v1132_v47 = vand.u32 2147483647, %v1122_v8  ;;  %vm1128_vm7 = vweird.f32 %v1122_v8 }
 0xc5b   :  { %v1115_v50 = vor.u32 1.1754944e-38, %v1114_v26  ;;  %vm1113_vm13 = vcmp.eq.f32.partialorder %v1112_v37, 8.507059e+37 }
 0xc5c   :  { %v1135_v58 = vor.u32 1.1754944e-38, %v1134_v63  ;;  %vm1133_vm9 = vcmp.eq.f32.partialorder %v1132_v47, 8.507059e+37 }
 0xc5f   :  { %v1430_v27 = vpop.eup %1429 }
 0xc60   :  { %v1432_v29 = vpop.eup %1431  ;;  %v1104_v32 = vmul.f32 %v1430_v27, %v1102_v9  ;;  %vm1109_vm10 = vweird.f32 %v1430_v27 }
 0xc61   :  { %v1124_v56 = vmul.f32 %v1432_v29, %v1122_v8  ;;  %vm1129_vm6 = vweird.f32 %v1432_v29  ;;  %vm1110_vm12 = vmor %vm1108_vm11, %vm1109_vm10 }
 0xc62   :  { %v1105_v60 = vsub.f32 1.0, %v1104_v32  ;;  %vm1130_vm8 = vmor %vm1128_vm7, %vm1129_vm6 }
 0xc63   :  { %v1125_v57 = vsub.f32 1.0, %v1124_v56 }
 0xc64   :  { %v1106_v2 = vmul.f32 %v1430_v27, %v1105_v60 }
 0xc65   :  { %v1126_v46 = vmul.f32 %v1432_v29, %v1125_v57 }
 0xc66   :  { %v1107_v33 = vadd.f32 %v1430_v27, %v1106_v2 }
 0xc67   :  { %v1127_v5 = vadd.f32 %v1432_v29, %v1126_v46 }
 0xc68   :  { %v1111_v59 = vsel %vm1110_vm12, %v1430_v27, %v1107_v33 }
 0xc69   :  { %v1131_v52 = vsel %vm1130_vm8, %v1432_v29, %v1127_v5  ;;  %v1116_v45 = vsel %vm1113_vm13, %v1115_v50, %v1111_v59 }
 0xc6a   :  { %v1136_v30 = vsel %vm1133_vm9, %v1135_v58, %v1131_v52  ;;  %v1141_v49 = vsub.f32 1.0, %v1116_v45  ;;  %v1143_v61 = vmul.f32 %v1116_v45, %v2558_v36 }
 0xc6b   :  { %v1138_v34 = vmul.f32 %v1136_v30, %v1097_v31 }
 0xc6d   :  { %v1139_v38 = vadd.f32 %v1337_v28, %v1138_v34 }
 0xc6f   :  { %1433 = vtanh.f32 %v1139_v38 }
 0xc75   :  { %v1434_v39 = vpop.eup %1433 }
 0xc76   :  { %v1142_v44 = vmul.f32 %v1434_v39, %v1141_v49  ;;  %v1343_v49 = vld [vmem:[%s2618_s0 + $0xb8] sm:$0xff] }
 0xc78   :  { %v2585_v53 = vadd.f32 %v1143_v61, %v1142_v44 }
 0xc7a   :  { %1340 = vst [vmem:[%s2619_s4 + $0x30] sm:$0xff] %v2585_v53  ;;  %1169 = vmatmul.f32.vlgmr.msrb.gmra.mxu1 %v2585_v53  ;;  %1189 = vmatmul.f32.vlgmr.msrb.gmra.mxu2 %v2585_v53 }
 0xc7b   :  { %1209 = vmatmul.f32.vlgmr.msrb.gmra.mxu3 %v2585_v53 }
 0xcf7   :  { %v1170_v54 = vpop.f32.mrf.mxu1 }
 0xcfd   :  { %v1190_v41 = vpop.f32.mrf.mxu2 }
 0xcfe   :  { %v1213_v0 = vadd.f32 %v1190_v41, %v1170_v54  ;;  %v1210_v3 = vpop.f32.mrf.mxu3 }
 0xd00   :  { %v1214_v24 = vadd.f32 %v1213_v0, %v1210_v3 }
 0xd02   :  { %1215 = vadd.xlane.f32.xlu2 %v1214_v24 }
 0xd75   :  { %v1216_v36 = vpop.xlane.xlu2 %1215 }
 0xd76   :  { %v1217_v20 = vmul.f32 %v1216_v36, %v2701_v16 }
 0xd78   :  { %v1218_v4 = vsub.f32 %v1170_v54, %v1217_v20  ;;  %v1219_v7 = vsub.f32 %v1190_v41, %v1217_v20  ;;  %v1220_v6 = vsub.f32 %v1210_v3, %v1217_v20 }
 0xd7a   :  { %v1221_v12 = vmul.f32 %v1218_v4, %v1218_v4  ;;  %v1222_v14 = vmul.f32 %v1219_v7, %v1219_v7  ;;  %v1223_v1 = vmul.f32 %v1220_v6, %v1220_v6 }
 0xd7c   :  { %v1224_v13 = vadd.f32 %v1222_v14, %v1221_v12 }
 0xd7e   :  { %v1225_v19 = vadd.f32 %v1224_v13, %v1223_v1 }
 0xd80   :  { %1226 = vadd.xlane.f32.xlu0 %v1225_v19 }
 0xdf3   :  { %v1227_v15 = vpop.xlane.xlu0 %1226 }
 0xdf4   :  { %v1228_v17 = vmul.f32 %v1227_v15, %v2701_v16  ;;  %v1341_v16 = vld [vmem:[%s2618_s0 + $0xa8] sm:$0xff] }
 0xdf6   :  { %v1229_v42 = vadd.f32 1e-05, %v1228_v17 }
 0xdf8   :  { %1435 = vrsqrt.f32 %v1229_v42  ;;  %vm1236_vm15 = vweird.f32 %v1229_v42 }
 0xdfe   :  { %v1436_v18 = vpop.eup %1435 }
 0xdff   :  { %v1231_v21 = vmul.f32 %v1436_v18, %v1229_v42  ;;  %vm1237_vm14 = vweird.f32 %v1436_v18 }
 0xe00   :  { %vm1238_vm0 = vmor %vm1236_vm15, %vm1237_vm14 }
 0xe01   :  { %v1232_v25 = vmul.f32 %v1436_v18, %v1231_v21 }
 0xe03   :  { %v1233_v23 = vmul.f32 0.5, %v1232_v25 }
 0xe05   :  { %v1234_v10 = vsub.f32 1.5, %v1233_v23 }
 0xe07   :  { %v1235_v22 = vmul.f32 %v1436_v18, %v1234_v10 }
 0xe09   :  { %v1239_v9 = vsel %vm1238_vm0, %v1436_v18, %v1235_v22 }
 0xe0a   :  { %v1240_v8 = vmul.f32 %v1239_v9, %v1218_v4  ;;  %v1241_v27 = vmul.f32 %v1239_v9, %v1219_v7  ;;  %v1242_v52 = vmul.f32 %v1239_v9, %v1220_v6 }
 0xe0c   :  { %v1243_v29 = vmul.f32 %v1240_v8, %v2702_v48  ;;  %v1244_v32 = vmul.f32 %v1241_v27, %v2703_v43  ;;  %v1245_v33 = vmul.f32 %v1242_v52, %v1966_v40 }
 0xe0e   :  { %v1246_v56 = vadd.f32 %v1243_v29, %v2731_v11  ;;  %v1247_v60 = vadd.f32 %v1244_v32, %v1954_v51  ;;  %v1248_v50 = vadd.f32 %v1245_v33, %v1968_v55 }
 0xe10   :  { %v1249_v57 = vadd.f32 %v1341_v16, %v1246_v56  ;;  %v1269_v63 = vadd.f32 %v1342_v35, %v1247_v60 }
 0xe12   :  { %v1344_v62 = vmul.f32 -1.442695, %v1249_v57  ;;  %v1345_v46 = vmul.f32 -1.442695, %v1269_v63 }
 0xe14   :  { %1437 = vpow2.f32 %v1344_v62 }
 0xe15   :  { %1439 = vpow2.f32 %v1345_v46 }
 0xe1a   :  { %v1438_v48 = vpop.eup %1437 }
 0xe1b   :  { %v1440_v43 = vpop.eup %1439  ;;  %v1253_v47 = vadd.f32 1.0, %v1438_v48 }
 0xe1c   :  { %v1273_v2 = vadd.f32 1.0, %v1440_v43 }
 0xe1d   :  { %1441 = vrcp.f32 %v1253_v47  ;;  %v1265_v40 = vand.u32 2147483648, %v1253_v47  ;;  %vm1259_vm6 = vweird.f32 %v1253_v47  ;;  %v1263_v54 = vand.u32 2147483647, %v1253_v47 }
 0xe1e   :  { %1443 = vrcp.f32 %v1273_v2  ;;  %v1285_v51 = vand.u32 2147483648, %v1273_v2  ;;  %v1283_v26 = vand.u32 2147483647, %v1273_v2  ;;  %vm1279_vm2 = vweird.f32 %v1273_v2 }
 0xe1f   :  { %v1266_v3 = vor.u32 1.1754944e-38, %v1265_v40  ;;  %vm1264_vm8 = vcmp.eq.f32.partialorder %v1263_v54, 8.507059e+37 }
 0xe20   :  { %v1286_v59 = vor.u32 1.1754944e-38, %v1285_v51  ;;  %vm1284_vm4 = vcmp.eq.f32.partialorder %v1283_v26, 8.507059e+37 }
 0xe23   :  { %v1442_v5 = vpop.eup %1441 }
 0xe24   :  { %v1444_v58 = vpop.eup %1443  ;;  %v1255_v31 = vmul.f32 %v1442_v5, %v1253_v47  ;;  %vm1260_vm5 = vweird.f32 %v1442_v5 }
 0xe25   :  { %v1275_v28 = vmul.f32 %v1444_v58, %v1273_v2  ;;  %vm1280_vm1 = vweird.f32 %v1444_v58  ;;  %vm1261_vm7 = vmor %vm1259_vm6, %vm1260_vm5 }
 0xe26   :  { %v1256_v11 = vsub.f32 1.0, %v1255_v31  ;;  %vm1281_vm3 = vmor %vm1279_vm2, %vm1280_vm1 }
 0xe27   :  { %v1276_v30 = vsub.f32 1.0, %v1275_v28 }
 0xe28   :  { %v1257_v37 = vmul.f32 %v1442_v5, %v1256_v11 }
 0xe29   :  { %v1277_v34 = vmul.f32 %v1444_v58, %v1276_v30 }
 0xe2a   :  { %v1258_v39 = vadd.f32 %v1442_v5, %v1257_v37 }
 0xe2b   :  { %v1278_v38 = vadd.f32 %v1444_v58, %v1277_v34 }
 0xe2c   :  { %v1262_v0 = vsel %vm1261_vm7, %v1442_v5, %v1258_v39 }
 0xe2d   :  { %v1282_v45 = vsel %vm1281_vm3, %v1444_v58, %v1278_v38  ;;  %v1267_v55 = vsel %vm1264_vm8, %v1266_v3, %v1262_v0 }
 0xe2e   :  { %v1287_v44 = vsel %vm1284_vm4, %v1286_v59, %v1282_v45  ;;  %v1292_v24 = vsub.f32 1.0, %v1267_v55  ;;  %v1294_v4 = vmul.f32 %v1267_v55, %v2585_v53 }
 0xe2f   :  { %v1289_v61 = vmul.f32 %v1287_v44, %v1248_v50 }
 0xe31   :  { %v1290_v41 = vadd.f32 %v1343_v49, %v1289_v61 }
 0xe33   :  { %1445 = vtanh.f32 %v1290_v41 }
 0xe39   :  { %v1446_v36 = vpop.eup %1445 }
 0xe3a   :  { %v1293_v20 = vmul.f32 %v1446_v36, %v1292_v24 }
 0xe3c   :  { %v1295_v7 = vadd.f32 %v1294_v4, %v1293_v20 }
 0xe3e   :  { %1346 = vst [vmem:[%s2619_s4 + $0x38] sm:$0xff] %v1295_v7 }

</bundles_post_ra>
